<compile_context>
chip_gen: v5e
topology: v5e:2x2
jax: 0.10.0
libtpu: 0.0.40
codegen_flags: <defaults>
</compile_context>

<pallas_src>
import functools

import numpy as np
import jax
import jax.numpy as jnp
from jax.experimental import pallas as pl
from jax.experimental.pallas import tpu as pltpu


def _round_up(x, m):
    return ((int(x) + m - 1) // m) * m


def _tpu_vmem_capacity():
    try:
        return int(pltpu.get_tpu_info().vmem_capacity_bytes)
    except Exception:
        return 64 * 1024 * 1024              # assume the smallest (v7x: 64 MiB/TC) if query fails


_VMEM_CAP = _tpu_vmem_capacity()
_VMEM_LIMIT = max(32 * 1024 * 1024, min(int(_VMEM_CAP * 0.7), 96 * 1024 * 1024))


def _default_tiles():
    # v5e/v6e have 128 MiB VMEM/TC -> go big; v7x has 64 MiB -> (512, 1024) keeps the
    # double-buffered footprint well under the ~45 MiB scoped limit.
    if _VMEM_CAP >= 100 * 1024 * 1024:
        return 1024, 2048
    return 512, 1024


# ----------------------------------------------------------------------------
# Tiled dense matmul (entity projections W_source / W_target)
# ----------------------------------------------------------------------------
def _matmul_kernel(a_ref, b_ref, o_ref, acc_ref):
    @pl.when(pl.program_id(2) == 0)
    def _init():
        acc_ref[...] = jnp.zeros_like(acc_ref)

    acc_ref[...] += jnp.dot(a_ref[...], b_ref[...],
                            preferred_element_type=jnp.float32)

    @pl.when(pl.program_id(2) == pl.num_programs(2) - 1)
    def _done():
        o_ref[...] = acc_ref[...].astype(o_ref.dtype)


def matmul_pallas(a, b, *, tm_max=256, tn_max=256, tk_max=512, min_pallas_dim=128,
                  operand_dtype=jnp.bfloat16):
    a = jnp.asarray(a, jnp.float32)
    b = jnp.asarray(b, jnp.float32)
    M, K = a.shape
    K2, N = b.shape
    assert K == K2
    if min(M, N, K) < min_pallas_dim:
        # tiny / skinny projection: XLA fuses this better than a padded Pallas launch
        return jnp.dot(a, b, preferred_element_type=jnp.float32)
    tm = min(tm_max, _round_up(M, 8))
    tn = min(tn_max, _round_up(N, 128))
    tk = min(tk_max, _round_up(K, 128))
    Mp, Np, Kp = _round_up(M, tm), _round_up(N, tn), _round_up(K, tk)
    a_p = jnp.pad(a, ((0, Mp - M), (0, Kp - K))).astype(operand_dtype)   # bf16 MXU operands
    b_p = jnp.pad(b, ((0, Kp - K), (0, Np - N))).astype(operand_dtype)
    out = pl.pallas_call(
        _matmul_kernel,
        out_shape=jax.ShapeDtypeStruct((Mp, Np), jnp.float32),
        grid=(Mp // tm, Np // tn, Kp // tk),
        in_specs=[pl.BlockSpec((tm, tk), lambda i, j, k: (i, k)),
                  pl.BlockSpec((tk, tn), lambda i, j, k: (k, j))],
        out_specs=pl.BlockSpec((tm, tn), lambda i, j, k: (i, j)),
        scratch_shapes=[pltpu.VMEM((tm, tn), jnp.float32)],
        compiler_params=pltpu.CompilerParams(
            dimension_semantics=("parallel", "parallel", "arbitrary"),
            vmem_limit_bytes=_VMEM_LIMIT),
    )(a_p, b_p)
    return out[:M, :N]


# ----------------------------------------------------------------------------
# Fused multi-head GAT layer kernel (CSR over targets, scalar-prefetched offsets)
# ----------------------------------------------------------------------------
def _build_head_tables(a_list, a2_list):
    """Pack all heads into one projection table P (Dp, 2*Cp) and denominator map D (Cp, Cp)."""
    H = len(a_list)
    a0 = np.asarray(a_list[0], np.float32)
    F, Din = a0.shape
    Dp = Din + 1                       # +1 ones column feeds the rowsum slots
    C = H * F + H                      # head blocks + one rowsum column per head
    C_pad = _round_up(C, 128)          # lane-dense output width
    P = np.zeros((Dp, 2 * C_pad), np.float32)
    D = np.zeros((C_pad, C_pad), np.float32)
    for h in range(H):
        a = np.asarray(a_list[h], np.float32)                    # (F, Din)
        a2 = np.asarray(a2_list[h], np.float32).reshape(F, 1)
        score_col = a.T @ a2                                      # (Din, 1): a2 folded into P
        P[:Din, h * F:(h + 1) * F] = a.T                          # projection block
        P[Din, H * F + h] = 1.0                                   # rowsum "ones" column
        P[:Din, C_pad + h * F:C_pad + (h + 1) * F] = score_col    # score broadcast over block
        P[:Din, C_pad + H * F + h] = score_col[:, 0]              # score gating of rowsum col
        D[H * F + h, h * F:(h + 1) * F] = 1.0                     # rowsum -> head block
        D[H * F + h, H * F + h] = 1.0
    return jnp.asarray(P), jnp.asarray(D), H, F, Din, Dp, C_pad


def build_edge_csr(tgt_cont, n_nodes, tn, te):
    """Sort edges by target node and pack them into per-node-tile segments, each padded to a
    multiple of `te` edges (at least one block per node tile).  Host numpy outputs:
      row_src   (E_pad,)  original edge index feeding each padded row (padding -> edge 0, masked)
      tgt_local (E_pad,)  target row WITHIN the owning node tile (-1 for padding rows)
      blk_off   (n_tiles,) first edge-block index of each node tile's segment
      nblk      (n_tiles,) number of edge blocks in the segment (>= 1)
    """
    tgt = np.asarray(tgt_cont, np.int64)
    E = int(tgt.shape[0])
    n_tiles = _round_up(n_nodes, tn) // tn
    order = np.argsort(tgt, kind="stable")
    tgt_sorted = tgt[order]
    tile_of_edge = tgt_sorted // tn
    counts = np.bincount(tile_of_edge, minlength=n_tiles).astype(np.int64)
    nblk = np.maximum(1, (counts + te - 1) // te).astype(np.int32)
    blk_off = np.zeros(n_tiles, np.int32)
    blk_off[1:] = np.cumsum(nblk)[:-1]
    e_pad = int(nblk.sum()) * te
    edge_start = np.zeros(n_tiles, np.int64)
    edge_start[1:] = np.cumsum(counts)[:-1]
    dst = blk_off[tile_of_edge].astype(np.int64) * te \
        + (np.arange(E, dtype=np.int64) - edge_start[tile_of_edge])
    row_src = np.zeros(e_pad, np.int64)            # padding rows replicate edge 0 (masked below)
    row_src[dst] = order
    tgt_local = np.full(e_pad, -1, np.int32)       # -1 never matches a row -> zero contribution
    tgt_local[dst] = (tgt_sorted - tile_of_edge * tn).astype(np.int32)
    return row_src, tgt_local, blk_off, nblk


def _gat_heads_kernel(blk_off_ref, nblk_ref, ef_ref, p_ref, d_ref, tgt_ref,
                      out_ref, acc_ref, *, alpha, concat, mxu_dtype):
    # blk_off_ref: (n_tiles,) SMEM   first edge-block of this node tile's CSR segment
    # nblk_ref   : (n_tiles,) SMEM   number of edge blocks in the segment (>= 1)
    # ef_ref     : (te, Dp)   mxu    edge features (+ trailing ones column), CSR block order
    # p_ref      : (Dp, 2*Cp) mxu    [head blocks + rowsum ones | score columns (a2 folded in)]
    # d_ref      : (Cp, Cp)   f32    maps rowsum columns back onto their head block
    # tgt_ref    : (1, te)    int32  target row WITHIN this node tile (-1 = padding)
    # out_ref    : (tn, Cp)   f32    normalized head outputs (junk in non-head columns)
    # acc_ref    : (tn, Cp)   f32    scatter accumulator, resident across the edge-block axis
    ni = pl.program_id(0)
    ei = pl.program_id(1)
    tn, c_pad = acc_ref.shape
    n_active = nblk_ref[ni]

    @pl.when(ei == 0)
    def _init():
        acc_ref[...] = jnp.zeros_like(acc_ref)

    @pl.when(ei < n_active)            # trailing (clamped) blocks of short segments do nothing
    def _accumulate():
        # One wide MXU matmul: left half = projected features (+1 in rowsum cols),
        # right half = attention scores broadcast over each head block.
        ms = jnp.dot(ef_ref[...], p_ref[...], preferred_element_type=jnp.float32)  # (te, 2*Cp)
        m_all = ms[:, :c_pad]
        s_all = ms[:, c_pad:]
        lrelu = jnp.where(s_all > 0, s_all, alpha * s_all)                # LeakyReLU
        # clamp so edge_e cannot overflow to inf (inf * approx-recip -> NaN otherwise)
        edge_e = jnp.exp(jnp.minimum(-lrelu, 60.0))
        w = m_all * edge_e        # head cols: edge_e*m ; rowsum cols: edge_e ; pad cols: 0
        # scatter-add over within-tile target rows as a one-hot MXU matmul (f32 accumulation)
        row_ids = jax.lax.broadcasted_iota(jnp.int32, (tn, 1), 0)
        onehot = (row_ids == tgt_ref[...]).astype(mxu_dtype)              # (tn, te)
        acc_ref[...] += jnp.dot(onehot, w.astype(mxu_dtype),
                                preferred_element_type=jnp.float32)

    @pl.when(ei == n_active - 1)
    def _finalize():
        acc = acc_ref[...]
        # broadcast each head's rowsum column across that head's output block
        denom = jnp.dot(acc, d_ref[...], preferred_element_type=jnp.float32)
        denom = jnp.where(denom == 0.0, 1e-12, denom)
        h = acc * pl.reciprocal(denom, approx=True)
        if concat:
            h = jnp.where(h > 0, h, jnp.exp(h) - 1.0)                     # F.elu
        out_ref[...] = h.astype(out_ref.dtype)


def gat_heads_pallas(edge_feats_csr, a_list, a2_list, tgt_local, blk_off, nblk,
                     n_nodes, tn, te, alpha, concat, *, mxu_dtype=jnp.bfloat16):
    """All heads of one GAT layer in a single pallas_call over CSR-packed edges.

    edge_feats_csr: (E_pad, Din) edge features already permuted into CSR block order (node
    tile i owns edge blocks [blk_off[i], blk_off[i]+nblk[i])).  Returns (n_nodes, H*F) f32.
    """
    E_pad, Din_in = edge_feats_csr.shape
    P, D, H, F, Din, Dp, C_pad = _build_head_tables(a_list, a2_list)
    assert Din_in == Din
    blk_off = np.asarray(blk_off, np.int32)
    nblk = np.asarray(nblk, np.int32)
    N_pad = _round_up(n_nodes, tn)
    n_tiles = N_pad // tn
    assert blk_off.shape == (n_tiles,) and nblk.shape == (n_tiles,)
    assert E_pad == int(nblk.sum()) * te
    max_blk = int(nblk.max())

    ef = jnp.concatenate([jnp.asarray(edge_feats_csr, jnp.float32),
                          jnp.ones((E_pad, 1), jnp.float32)], axis=1).astype(mxu_dtype)
    tgt = jnp.asarray(np.asarray(tgt_local, np.int32).reshape(1, E_pad))

    def _edge_block(ni, ei, off, nb):
        # clamp to the segment's last block: block index stops changing -> no DMA on skipped steps
        return off[ni] + jnp.minimum(ei, nb[ni] - 1)

    kern = functools.partial(_gat_heads_kernel, alpha=float(alpha), concat=bool(concat),
                             mxu_dtype=mxu_dtype)
    out = pl.pallas_call(
        kern,
        out_shape=jax.ShapeDtypeStruct((N_pad, C_pad), jnp.float32),
        grid_spec=pltpu.PrefetchScalarGridSpec(
            num_scalar_prefetch=2,
            grid=(n_tiles, max_blk),                       # edge-block axis last = reduction
            in_specs=[
                pl.BlockSpec((te, Dp),
                             lambda ni, ei, off, nb: (_edge_block(ni, ei, off, nb), 0)),
                pl.BlockSpec((Dp, 2 * C_pad), lambda ni, ei, off, nb: (0, 0)),
                pl.BlockSpec((C_pad, C_pad), lambda ni, ei, off, nb: (0, 0)),
                pl.BlockSpec((1, te),
                             lambda ni, ei, off, nb: (0, _edge_block(ni, ei, off, nb))),
            ],
            out_specs=pl.BlockSpec((tn, C_pad), lambda ni, ei, off, nb: (ni, 0)),
            scratch_shapes=[pltpu.VMEM((tn, C_pad), jnp.float32)]),
        compiler_params=pltpu.CompilerParams(
            dimension_semantics=("parallel", "arbitrary"),
            vmem_limit_bytes=_VMEM_LIMIT),
    )(jnp.asarray(blk_off), jnp.asarray(nblk), ef, P.astype(mxu_dtype), D, tgt)
    return out[:n_nodes, :H * F]


# ----------------------------------------------------------------------------
# Pure-JAX reference (correctness check only)
# ----------------------------------------------------------------------------
def gat_heads_ref(edge_feats, a_list, a2_list, tgt_cont, n_nodes, alpha, concat):
    edge_feats = jnp.asarray(edge_feats, jnp.float32)
    tgt = jnp.asarray(tgt_cont, jnp.int32)
    outs = []
    for a, a2 in zip(a_list, a2_list):
        a = jnp.asarray(a, jnp.float32)
        a2 = jnp.asarray(a2, jnp.float32)
        m = edge_feats @ a.T
        s = jnp.sum(m * a2, axis=-1, keepdims=True)
        lrelu = jnp.where(s > 0, s, alpha * s)
        edge_e = jnp.exp(-lrelu)
        rowsum = jnp.zeros((n_nodes, 1), jnp.float32).at[tgt].add(edge_e)
        h = jnp.zeros((n_nodes, m.shape[1]), jnp.float32).at[tgt].add(edge_e * m)
        h = h / jnp.where(rowsum == 0.0, 1e-12, rowsum)
        if concat:
            h = jnp.where(h > 0, h, jnp.exp(h) - 1.0)
        outs.append(h)
    return jnp.concatenate(outs, axis=1)


# ----------------------------------------------------------------------------
# SpGAT_modified forward (layer_num = 2)
# ----------------------------------------------------------------------------
def spgat_forward(params, entity_embeddings, relation_embed, edge_list_np, edge_type_np,
                  cfg, use_pallas=True, mxu_dtype=jnp.bfloat16, tn_max=None, te_max=None):
    alpha = cfg["alpha"]
    if tn_max is None or te_max is None:
        d_tn, d_te = _default_tiles()
        tn_max = tn_max or d_tn
        te_max = te_max or d_te

    # ---- host-side index bookkeeping (mirrors the python loops / dict in the torch code) ----
    e0 = np.asarray(edge_list_np[0])
    e1 = np.asarray(edge_list_np[1])
    et = np.asarray(edge_type_np)
    scatter_entity = np.unique(np.concatenate([e0, e1]))
    scatter_target = np.unique(e0)
    tgt_set = set(int(t) for t in scatter_target)
    src_only = np.array([int(s) for s in e1 if int(s) not in tgt_set], dtype=np.int64)
    scatter_source = np.unique(src_only) if src_only.size else src_only
    cont = {int(eid): i for i, eid in enumerate(scatter_entity)}          # scatter_map_continuous
    tgt_cont = np.array([cont[int(t)] for t in e0], dtype=np.int32)
    src_cont = np.array([cont[int(s)] for s in e1], dtype=np.int32)
    N = len(scatter_entity)
    E = len(e0)

    if use_pallas:
        tn = min(tn_max, _round_up(N, 8))
        te = min(te_max, _round_up(E, 128))
        row_src, tgt_local, blk_off, nblk = build_edge_csr(tgt_cont, N, tn, te)
        # compose the CSR permutation + padding into the per-edge index arrays so the edge
        # features are gathered directly in CSR block order (no extra HBM pass).
        e0_g, e1_g, et_g = e0[row_src], e1[row_src], et[row_src]
        tgtc_g, srcc_g = tgt_cont[row_src], src_cont[row_src]

        def head_fn(edge_feats, a_list, a2_list, concat):
            return gat_heads_pallas(edge_feats, a_list, a2_list, tgt_local, blk_off, nblk,
                                    N, tn, te, alpha, concat, mxu_dtype=mxu_dtype)
        mm_fn = matmul_pallas
    else:
        e0_g, e1_g, et_g = e0, e1, et
        tgtc_g, srcc_g = tgt_cont, src_cont

        def head_fn(edge_feats, a_list, a2_list, concat):
            return gat_heads_ref(edge_feats, a_list, a2_list, tgt_cont, N, alpha, concat)
        mm_fn = lambda a, b: jnp.asarray(a, jnp.float32) @ jnp.asarray(b, jnp.float32)

    x = jnp.asarray(entity_embeddings, jnp.float32)
    if scatter_source.size:
        entity_source_embed = mm_fn(x[scatter_source], params["W_source"])
    entity_target_embed = mm_fn(x[scatter_target], params["W_target"])

    # TODO(synk): fuse the edge-feature gather/concat (x[e0], x[e1], rel[edge_type]) into the
    # head kernel via scalar-prefetched row indices to save one E x Din HBM round trip / layer.
    edge_embed = jnp.asarray(relation_embed, jnp.float32)[et_g]
    edge_feats = jnp.concatenate([x[e0_g], x[e1_g], edge_embed], axis=1)  # edge_h.T layout

    # ---------------- layer 0 : all nheads fused, concat=True ----------------
    x = head_fn(edge_feats, params["a0"], params["a2_0"], True)
    # dropout = 0.0 -> identity
    if scatter_source.size:
        src_rows = np.array([cont[int(s)] for s in scatter_source], dtype=np.int32)
        x = x.at[src_rows].set(entity_source_embed)
    # tiny relation-weight matmuls: let XLA handle them (no Pallas launch overhead)
    out_relation_1 = jnp.asarray(relation_embed, jnp.float32) @ jnp.asarray(params["W1"], jnp.float32)
    edge_embed = out_relation_1[et_g]
    edge_feats = jnp.concatenate([x[tgtc_g], x[srcc_g], edge_embed], axis=1)

    # ---------------- last layer : single head, concat=False ----------------
    x = head_fn(edge_feats, [params["a_last"]], [params["a2_last"]], False)
    out_relation_1 = out_relation_1 @ jnp.asarray(params["W3"], jnp.float32)
    x = jnp.where(x > 0, x, jnp.exp(x) - 1.0)                             # F.elu

    # ---------------- write updated target embeddings back ----------------
    tgt_rows = np.array([cont[int(t)] for t in scatter_target], dtype=np.int32)
    target_embed = x[tgt_rows] + entity_target_embed
    norm = jnp.sqrt(jnp.sum(target_embed * target_embed, axis=1, keepdims=True))
    normed = target_embed / jnp.maximum(norm, 1e-12)                      # F.normalize p=2, dim=1
    entity_out = jnp.asarray(entity_embeddings, jnp.float32).at[scatter_target].set(normed)

    return entity_out, out_relation_1


# ----------------------------------------------------------------------------
if __name__ == "__main__":
    key = jax.random.PRNGKey(0)
    num_nodes, nfeat, nhid, relation_dim = 12, 16, 8, 8
    nheads, layer_num, num_relations = 2, 2, 4
    alpha, dropout = 0.2, 0.0  # dropout=0.0 -> identity (eval semantics)

    keys = jax.random.split(key, 16)
    entity_embeddings = jax.random.normal(keys[0], (num_nodes, nfeat), jnp.float32)
    relation_embed = jax.random.normal(keys[1], (num_relations, relation_dim), jnp.float32)

    # fixed, deterministic sparse graph (E = 10 edges); targets {0..5}, source-only {6..11}
    edge_list = np.array([[0, 1, 2, 0, 3, 4, 1, 2, 5, 0],
                          [6, 7, 8, 1, 9, 10, 2, 3, 11, 4]], dtype=np.int32)
    edge_type = np.array([0, 1, 2, 3, 0, 1, 2, 3, 0, 1], dtype=np.int32)

    def xavier(k, shape, gain=1.414):
        fan_out, fan_in = shape[0], shape[1]
        bound = gain * np.sqrt(6.0 / (fan_in + fan_out))
        return jax.random.uniform(k, shape, jnp.float32, -bound, bound)

    din0 = 2 * nfeat + relation_dim                 # layer-0 head input dim
    din_last = 2 * nhid * nheads + nhid             # last-layer head input dim
    params = {
        "a0": [xavier(keys[2 + h], (nhid, din0)) for h in range(nheads)],
        "a2_0": [xavier(keys[4 + h], (1, nhid)) for h in range(nheads)],
        "a_last": xavier(keys[6], (nfeat, din_last)),
        "a2_last": xavier(keys[7], (1, nfeat)),
        "W1": xavier(keys[8], (relation_dim, nhid)),
        "W3": xavier(keys[9], (nhid, nfeat)),
        "W_source": xavier(keys[10], (nfeat, nhid * nheads)),
        "W_target": xavier(keys[11], (nfeat, nfeat)),
    }
    cfg = {"nheads": nheads, "alpha": alpha}

    # sanity check of the tiled matmul kernel (bf16 operands, f32 accumulation)
    mm_a = jax.random.normal(keys[12], (256, 384), jnp.float32)
    mm_b = jax.random.normal(keys[13], (384, 512), jnp.float32)
    mm_out = jax.block_until_ready(matmul_pallas(mm_a, mm_b))
    assert jnp.allclose(mm_out, mm_a @ mm_b, rtol=5e-2, atol=5e-1), "matmul kernel mismatch"

    # pure-JAX reference
    ent_ref, rel_ref = spgat_forward(params, entity_embeddings, relation_embed,
                                     edge_list, edge_type, cfg, use_pallas=False)

    # Pallas with f32 MXU operands (tight check; tolerance covers the approx reciprocal)
    ent_f32, rel_f32 = spgat_forward(params, entity_embeddings, relation_embed,
                                     edge_list, edge_type, cfg, use_pallas=True,
                                     mxu_dtype=jnp.float32)
    ent_f32 = jax.block_until_ready(ent_f32)
    assert ent_f32.shape == (num_nodes, nfeat) and rel_f32.shape == (num_relations, nfeat)
    assert jnp.allclose(ent_f32, ent_ref, rtol=2e-2, atol=2e-2), "entity mismatch (f32 MXU)"
    assert jnp.allclose(rel_f32, rel_ref, rtol=1e-5, atol=1e-5), "relation embedding mismatch"

    # Pallas with bf16 MXU operands (default perf configuration; looser tolerance)
    ent_out, rel_out = spgat_forward(params, entity_embeddings, relation_embed,
                                     edge_list, edge_type, cfg, use_pallas=True,
                                     mxu_dtype=jnp.bfloat16)
    ent_out = jax.block_until_ready(ent_out)
    rel_out = jax.block_until_ready(rel_out)
    assert ent_out.shape == (num_nodes, nfeat) and rel_out.shape == (num_relations, nfeat)
    assert jnp.allclose(ent_out, ent_ref, rtol=1e-1, atol=1e-1), "entity mismatch (bf16 MXU)"
    assert jnp.allclose(rel_out, rel_ref, rtol=1e-5, atol=1e-5), "relation embedding mismatch"

    print("KERNEL_OK")
</pallas_src>

<mosaic_0001>
module attributes {stable_mosaic.version = 11 : i64} {
  func.func @_matmul_kernel(%arg0: i32, %arg1: i32, %arg2: i32, %arg3: memref<256x384xbf16, #tpu.memory_space<vmem>>, %arg4: memref<384x256xbf16, #tpu.memory_space<vmem>>, %arg5: memref<256x256xf32, #tpu.memory_space<vmem>>, %arg6: memref<256x256xf32, #tpu.memory_space<vmem>>) attributes {dimension_semantics = [#tpu.dimension_semantics<parallel>, #tpu.dimension_semantics<parallel>, #tpu.dimension_semantics<arbitrary>], iteration_bounds = array<i64: 1, 2, 1>, scalar_prefetch = 0 : i64, scratch_operands = 1 : i64, tpu.core_type = #tpu.core_type<tc>, window_params = [{transform_indices = @transform_0, window_bounds = array<i64: 256, 384>}, {transform_indices = @transform_1, window_bounds = array<i64: 384, 256>}, {transform_indices = @transform_2, window_bounds = array<i64: 256, 256>}]} {
    %c0_i32 = arith.constant 0 : i32
    %0 = arith.cmpi eq, %arg2, %c0_i32 : i32
    %1 = arith.extui %0 : i1 to i32
    %c0_i32_0 = arith.constant 0 : i32
    %2 = arith.cmpi ne, %1, %c0_i32_0 : i32
    scf.if %2 {
      %cst_10 = arith.constant 0.000000e+00 : f32
      %12 = vector.broadcast %cst_10 : f32 to vector<256x256xf32>
      %c0_11 = arith.constant 0 : index
      %c0_12 = arith.constant 0 : index
      %13 = vector.load %arg6[%c0_11, %c0_12] : memref<256x256xf32, #tpu.memory_space<vmem>>, vector<256x256xf32>
      tpu.vector_store %arg6[%c0_11, %c0_12], %12 {strides = array<i32>} : memref<256x256xf32, #tpu.memory_space<vmem>>, vector<256x256xf32>,
    } else {
    }
    %c0 = arith.constant 0 : index
    %c0_1 = arith.constant 0 : index
    %3 = vector.load %arg6[%c0, %c0_1] : memref<256x256xf32, #tpu.memory_space<vmem>>, vector<256x256xf32>
    %c0_2 = arith.constant 0 : index
    %c0_3 = arith.constant 0 : index
    %4 = vector.load %arg3[%c0_2, %c0_3] : memref<256x384xbf16, #tpu.memory_space<vmem>>, vector<256x384xbf16>
    %c0_4 = arith.constant 0 : index
    %c0_5 = arith.constant 0 : index
    %5 = vector.load %arg4[%c0_4, %c0_5] : memref<384x256xbf16, #tpu.memory_space<vmem>>, vector<384x256xbf16>
    %cst = arith.constant dense<0.000000e+00> : vector<256x256xf32>
    %6 = tpu.matmul %4, %5, %cst {dimension_numbers = #tpu.dot_dimension_numbers<[1], [0], [0], [1], [0, 0, 1, 1], [], []>} : vector<256x384xbf16>, vector<384x256xbf16>, vector<256x256xf32> -> vector<256x256xf32>
    %7 = arith.addf %3, %6 : vector<256x256xf32>
    %c0_6 = arith.constant 0 : index
    %c0_7 = arith.constant 0 : index
    %8 = vector.load %arg6[%c0_6, %c0_7] : memref<256x256xf32, #tpu.memory_space<vmem>>, vector<256x256xf32>
    tpu.vector_store %arg6[%c0_6, %c0_7], %7 {strides = array<i32>} : memref<256x256xf32, #tpu.memory_space<vmem>>, vector<256x256xf32>,
    %c0_i32_8 = arith.constant 0 : i32
    %9 = arith.cmpi eq, %arg2, %c0_i32_8 : i32
    %10 = arith.extui %9 : i1 to i32
    %c0_i32_9 = arith.constant 0 : i32
    %11 = arith.cmpi ne, %10, %c0_i32_9 : i32
    scf.if %11 {
      %c0_10 = arith.constant 0 : index
      %c0_11 = arith.constant 0 : index
      %12 = vector.load %arg6[%c0_10, %c0_11] : memref<256x256xf32, #tpu.memory_space<vmem>>, vector<256x256xf32>
      %c0_12 = arith.constant 0 : index
      %c0_13 = arith.constant 0 : index
      %13 = vector.load %arg5[%c0_12, %c0_13] : memref<256x256xf32, #tpu.memory_space<vmem>>, vector<256x256xf32>
      tpu.vector_store %arg5[%c0_12, %c0_13], %12 {strides = array<i32>} : memref<256x256xf32, #tpu.memory_space<vmem>>, vector<256x256xf32>,
    } else {
    }
    return
  }
  func.func @transform_0(%arg0: i32, %arg1: i32, %arg2: i32) -> (i32, i32) {
    %c0_i32 = arith.constant 0 : i32
    return %arg0, %arg2 : i32, i32
  }
  func.func @transform_1(%arg0: i32, %arg1: i32, %arg2: i32) -> (i32, i32) {
    %c0_i32 = arith.constant 0 : i32
    return %arg2, %arg1 : i32, i32
  }
  func.func @transform_2(%arg0: i32, %arg1: i32, %arg2: i32) -> (i32, i32) {
    %c0_i32 = arith.constant 0 : i32
    return %arg0, %arg1 : i32, i32
  }
}

</mosaic_0001>

<bundles_post_ra>
// kernel: tpu_custom_call.1
= control target key start
LH: loop header
LB: loop body
LE: loop exit
PB: predicated region body
PF: predicated region fallthrough
CT: control target
= control target key end

     0   :  { %7 = vsyncpa [#allocation4], 0  ;;  %s3192_s0 = inlined_call_operand.hbm [shape: bf16[256,384], index: 0, kind: input, shape index: {}]   ;;  %s3193_s1 = inlined_call_operand.hbm [shape: bf16[384,512], index: 1, kind: input, shape index: {}]   ;;  %s3194_s2 = inlined_call_operand.hbm [shape: f32[256,512], index: 2, kind: output, shape index: {}]  }
   0x1   :  { %8 = vsyncpa [#allocation7], 0 }
   0x2   :  { %10 = vsyncpa [#allocation7 + $0x1], 0 }
   0x3   :  { %11 = vsyncpa [#allocation5], 0 }
   0x4   :  { %13 = vsyncpa [#allocation5 + $0x1], 0  ;;  %s2653_s9 = smov 0   ;;  %s2655_s10 = smov 0  }
   0x5   :  { %s2657_s11 = smov 0   ;;  %s2659_s12 = smov 0  }
   0x6   :  { %s2661_s13 = smov 0   ;;  %s2663_s14 = smov 0  }
   0x7 LB: > { %s1885_s15 = sadd.s32 4294967295, %s2627_s14   ;;  %s1886_s16 = sadd.s32 4294967294, %s2627_s14   ;;  %s2627_s14 = sphi %s2663_s14, %s19_s14   ;;  %s2623_s13 = sphi %s2661_s13, %s3206_s13   ;;  %s2619_s12 = sphi %s2659_s12, %s3205_s12   ;;  %s2615_s11 = sphi %s2657_s11, %s3204_s11   ;;  %s2611_s10 = sphi %s2655_s10, %s3203_s10   ;;  %s2607_s9 = sphi %s2653_s9, %s3202_s9  }
   0x8   : > { %p88_p0 = scmp.ne.s32.totalorder %s2611_s10, %s2607_s9  ;;  %p2687_p1 = scmp.eq.s32.totalorder %s1885_s15, 0 }
   0x9   : > { %p2691_p2 = scmp.eq.s32.totalorder %s1885_s15, 1  ;;  %p120_p3 = scmp.eq.s32.totalorder %s1886_s16, 1 }
   0xa   : > { %p2697_p4 = por %p2687_p1, %p88_p0  ;;  %p1887_p5 = scmp.ge.s32.totalorder %s2627_s14, 1 }
   0xb   : > { %p2702_p6 = por %p120_p3, %p88_p0  ;;  %p127_p7 = scmp.lt.s32.totalorder %s2627_s14, 3 }
   0xc   : > { %s144_s23 = sshll.u32 %s3192_s0, 4  ;;  %s2629_s25 = smov [#allocation3]   ;;  %s145_s23 = int_to_ptr.hbm [resolvable:$true] %s144_s23 }
   0xd   : > { %p2710_p8 = pnand %p1887_p5, %p127_p7  ;;  %s146_s26 = sshll.u32 %s2629_s25, 4  ;;  %s147_s26 = int_to_ptr.vmem [resolvable:$true] %s146_s26 }
   0xe   : > { %p1889_p11 = scmp.ge.s32.totalorder %s2627_s14, 2  ;;  %s2630_s27 = smov 192  }
   0xf   : > { %p2408_p9 = pneg %p2710_p8  ;;  %s2631_s28 = smov 12  }
  0x10   : > { %s34_s29 = sadd.s32 1, %s2623_s13  ;;  %s75_s30 = sadd.s32 1, %s2615_s11 }
  0x11   : > { %p2409_p10 = pnand %p2408_p9, %p2687_p1  ;;  %p36_p12 = scmp.ge.s32.totalorder %s34_s29, 2 }
  0x12   : > { %p82_p13 = scmp.ne.s32.totalorder %s2615_s11, %s2611_s10  ;;  %p83_p0 = scmp.eq.s32.totalorder %s2627_s14, 0 }
  0x13   : > { %2411 = dma.hbm_to_vmem [thread:$0]  (!%p2409_p10), %s145_s23, 6144, %s147_s26, [#allocation4], %s2630_s27, %s2630_s27, %s2631_s28  }
  0x14   : > { %s3208_s29 = smov (%p36_p12, %s34_s29), 0  ;;  %p2726_p3 = por %p83_p0, %p82_p13 }
  0x15   : > { %p2732_p5 = por %p2691_p2, %p82_p13  ;;  %s71_s5 = ssub.s32 %s2623_s13, %s3208_s29 }
  0x16   : > { %p2421_p7 = scmp.lt.s32.totalorder %s2627_s14, 2  ;;  %p73_p9 = scmp.eq.s32.totalorder %s71_s5, 0 }
  0x17   : > { %s160_s6 = sand.u32 1, %s2615_s11   ;;  %s2284_s15 = sshll.u32 %s2623_s13, 3 }
  0x18   : > { %s2398_s7 = smul.u32 384, %s160_s6  ;;  %s172_s22 = scalar_lea.hbm %s3193_s1, %s2284_s15 }
  0x19   : > { %s2741_s8 = scalar_select %p73_p9, %s2615_s11, %s75_s30  }
  0x1a   : > { %s164_s23 = scalar_lea.vmem [#allocation6], %s2398_s7  ;;  %s173_s18 = sshll.u32 %s172_s22, 4  ;;  %s174_s18 = int_to_ptr.hbm [resolvable:$true] %s173_s18 }
  0x1b   : > { %s175_s25 = sshll.u32 %s164_s23, 4  ;;  %p2413_p2 = pnand %p2421_p7, %p2726_p3  ;;  %s176_s25 = int_to_ptr.vmem [resolvable:$true] %s175_s25 }
  0x1c   : > { %s161_s26 = scalar_lea.sflag [#allocation7], %s160_s6  ;;  %s2632_s27 = smov 256  }
  0x1d   : > { %s2633_s28 = smov 128   ;;  %s2634_s5 = smov 8  }
  0x1e   : > { %2415 = dma.hbm_to_vmem [thread:$0]  (!%p2413_p2), %s174_s18, 6144, %s176_s25, %s161_s26, %s2632_s27, %s2633_s28, %s2634_s5  }
  0x1f   : > { %187 = sbr.rel (%p2710_p8) target bundleno = 596 (0x254), region = 28 }
  0x24   : > { %2594 = dma.done.wait (%p2687_p1), [#allocation4], 6144  }
  0x25   : > { %2596 = vsyncadd (%p2687_p1), [#allocation4], 4294961152  ;;  %s2756_s30 = sand.u32 1, %s2611_s10  }
  0x26   : > { %s2399_s3 = smul.u32 384, %s2756_s30  ;;  %s195_s6 = scalar_lea.sflag [#allocation7], %s2756_s30 }
  0x28   : > { %s2760_s7 = scalar_lea.vmem [#allocation6], %s2399_s3 }
  0x29   : > { %2598 = dma.done.wait (%p2697_p4), %s195_s6, 6144  }
  0x2a   : > { %2600 = vsyncadd (%p2697_p4), %s195_s6, 4294961152  ;;  %v2145_v0 = vld [vmem:[%s2760_s7 + $0x70] sm:$0xf]  ;;  %v2348_v1 = vld [vmem:[%s2760_s7 + $0x74] sm:$0xf0]  ;;  %s1894_s17 = sshll.u32 %s2756_s30, 9 }
  0x2b   : > { %v2209_v2 = vld [vmem:[%s2760_s7 + $0xf0] sm:$0xf]  ;;  %v2146_v3 = vor.u32 %v2348_v1, %v2145_v0  ;;  %v2364_v4 = vld [vmem:[%s2760_s7 + $0xf4] sm:$0xf0]  ;;  %v2137_v5 = vld [vmem:[%s2760_s7 + $0x60] sm:$0xf] }
  0x2c   : > { %v2346_v6 = vld [vmem:[%s2760_s7 + $0x64] sm:$0xf0]  ;;  %v2210_v7 = vor.u32 %v2364_v4, %v2209_v2  ;;  %v2201_v8 = vld [vmem:[%s2760_s7 + $0xe0] sm:$0xf]  ;;  %v2129_v12 = vld [vmem:[%s2760_s7 + $0x50] sm:$0xf] }
  0x2d   : > { %v2362_v9 = vld [vmem:[%s2760_s7 + $0xe4] sm:$0xf0]  ;;  %966 = vmatpush.bf16.msra.mxu0 %v2146_v3  ;;  %2382 = vmatpush.bf16.msra.mxu2 %v2146_v3  ;;  %v2138_v10 = vor.u32 %v2346_v6, %v2137_v5  ;;  %v2344_v13 = vld [vmem:[%s2760_s7 + $0x54] sm:$0xf0]  ;;  %v2193_v14 = vld [vmem:[%s2760_s7 + $0xd0] sm:$0xf] }
  0x2e   : > { %1055 = vmatpush.bf16.msra.mxu1 %v2210_v7  ;;  %2390 = vmatpush.bf16.msra.mxu3 %v2210_v7  ;;  %v2202_v11 = vor.u32 %v2362_v9, %v2201_v8  ;;  %v2360_v15 = vld [vmem:[%s2760_s7 + $0xd4] sm:$0xf0]  ;;  %v2130_v16 = vor.u32 %v2344_v13, %v2129_v12  ;;  %v2121_v18 = vld [vmem:[%s2760_s7 + $0x40] sm:$0xf]  ;;  %v2342_v19 = vld [vmem:[%s2760_s7 + $0x44] sm:$0xf0] }
  0x2f   : > { %v2194_v17 = vor.u32 %v2360_v15, %v2193_v14  ;;  %v2185_v20 = vld [vmem:[%s2760_s7 + $0xc0] sm:$0xf]  ;;  %v2358_v21 = vld [vmem:[%s2760_s7 + $0xc4] sm:$0xf0]  ;;  %v2122_v22 = vor.u32 %v2342_v19, %v2121_v18  ;;  %v2113_v24 = vld [vmem:[%s2760_s7 + $0x30] sm:$0xf] }
  0x30   : > { %v2186_v23 = vor.u32 %v2358_v21, %v2185_v20  ;;  %v2340_v25 = vld [vmem:[%s2760_s7 + $0x34] sm:$0xf0]  ;;  %v2177_v26 = vld [vmem:[%s2760_s7 + $0xb0] sm:$0xf]  ;;  %v2105_v30 = vld [vmem:[%s2760_s7 + $0x20] sm:$0xf] }
  0x31   : > { %967 = vmatpush.bf16.msra.mxu0 %v2138_v10  ;;  %2383 = vmatpush.bf16.msra.mxu2 %v2138_v10  ;;  %v2356_v27 = vld [vmem:[%s2760_s7 + $0xb4] sm:$0xf0]  ;;  %v2114_v28 = vor.u32 %v2340_v25, %v2113_v24  ;;  %v2338_v31 = vld [vmem:[%s2760_s7 + $0x24] sm:$0xf0]  ;;  %v2169_v32 = vld [vmem:[%s2760_s7 + $0xa0] sm:$0xf] }
  0x32   : > { %1056 = vmatpush.bf16.msra.mxu1 %v2202_v11  ;;  %2391 = vmatpush.bf16.msra.mxu3 %v2202_v11  ;;  %v2178_v29 = vor.u32 %v2356_v27, %v2177_v26  ;;  %v2354_v33 = vld [vmem:[%s2760_s7 + $0xa4] sm:$0xf0]  ;;  %v2106_v34 = vor.u32 %v2338_v31, %v2105_v30  ;;  %v2097_v36 = vld [vmem:[%s2760_s7 + $0x10] sm:$0xf]  ;;  %v2336_v37 = vld [vmem:[%s2760_s7 + $0x14] sm:$0xf0] }
  0x33   : > { %v2170_v35 = vor.u32 %v2354_v33, %v2169_v32  ;;  %v2161_v38 = vld [vmem:[%s2760_s7 + $0x90] sm:$0xf]  ;;  %v2352_v39 = vld [vmem:[%s2760_s7 + $0x94] sm:$0xf0]  ;;  %v2098_v40 = vor.u32 %v2336_v37, %v2097_v36  ;;  %v2089_v41 = vld [vmem:[%s2760_s7] sm:$0xf] }
  0x34   : > { %v2162_v42 = vor.u32 %v2352_v39, %v2161_v38  ;;  %v2334_v43 = vld [vmem:[%s2760_s7 + $0x4] sm:$0xf0]  ;;  %v2153_v44 = vld [vmem:[%s2760_s7 + $0x80] sm:$0xf]  ;;  %v2286_v47 = vld [vmem:[#allocation3 + $0x8] sm:$0xf0] }
  0x35   : > { %968 = vmatpush.bf16.msra.mxu0 %v2130_v16  ;;  %2384 = vmatpush.bf16.msra.mxu2 %v2130_v16  ;;  %v2350_v45 = vld [vmem:[%s2760_s7 + $0x84] sm:$0xf0]  ;;  %v1897_v46 = vld [vmem:[#allocation3] sm:$0xf]  ;;  %v2310_v49 = vld [vmem:[#allocation3 + $0xc8] sm:$0xf0]  ;;  %v2090_v54 = vor.u32 %v2334_v43, %v2089_v41 }
  0x36   : > { %1057 = vmatpush.bf16.msra.mxu1 %v2194_v17  ;;  %2392 = vmatpush.bf16.msra.mxu3 %v2194_v17  ;;  %v1993_v48 = vld [vmem:[#allocation3 + $0xc0] sm:$0xf]  ;;  %v2347_v50 = vld [vmem:[%s2760_s7 + $0x74] sm:$0xf]  ;;  %v2147_v51 = vld [vmem:[%s2760_s7 + $0x78] sm:$0xf0]  ;;  %v2154_v58 = vor.u32 %v2350_v45, %v2153_v44  ;;  %v2807_v3 = vor.u32 %v2286_v47, %v1897_v46 }
  0x37   : > { %v2273_v52 = vld [vmem:[%s2760_s7 + $0x170] sm:$0xf]  ;;  %v2380_v53 = vld [vmem:[%s2760_s7 + $0x174] sm:$0xf0]  ;;  %v2285_v55 = vld [vmem:[#allocation3 + $0x4] sm:$0xf]  ;;  %v2150_v62 = vor.u32 %v2347_v50, %v2147_v51  ;;  %v2809_v4 = vor.u32 %v2310_v49, %v1993_v48 }
  0x38   : > { %v1899_v56 = vld [vmem:[#allocation3 + $0xc] sm:$0xf0]  ;;  %v2309_v57 = vld [vmem:[#allocation3 + $0xc4] sm:$0xf]  ;;  %v2363_v60 = vld [vmem:[%s2760_s7 + $0xf4] sm:$0xf]  ;;  %v2274_v63 = vor.u32 %v2380_v53, %v2273_v52 }
  0x39   : > { %969 = vmatpush.bf16.msra.mxu0 %v2122_v22  ;;  %2385 = vmatpush.bf16.msra.mxu2 %v2122_v22  ;;  %v1995_v59 = vld [vmem:[#allocation3 + $0xcc] sm:$0xf0]  ;;  %v2211_v61 = vld [vmem:[%s2760_s7 + $0xf8] sm:$0xf0]  ;;  %v2379_v0 = vld [vmem:[%s2760_s7 + $0x174] sm:$0xf]  ;;  %v2814_v8 = vor.u32 %v2285_v55, %v1899_v56 }
  0x3a   : > { %1058 = vmatpush.bf16.msra.mxu1 %v2186_v23  ;;  %2393 = vmatpush.bf16.msra.mxu3 %v2186_v23  ;;  %v2275_v1 = vld [vmem:[%s2760_s7 + $0x178] sm:$0xf0]  ;;  %v2345_v2 = vld [vmem:[%s2760_s7 + $0x64] sm:$0xf]  ;;  %v2139_v5 = vld [vmem:[%s2760_s7 + $0x68] sm:$0xf0]  ;;  %v2816_v9 = vor.u32 %v2309_v57, %v1995_v59  ;;  %v2214_v10 = vor.u32 %v2363_v60, %v2211_v61 }
  0x3b   : > { %v2265_v6 = vld [vmem:[%s2760_s7 + $0x160] sm:$0xf]  ;;  %v2378_v7 = vld [vmem:[%s2760_s7 + $0x164] sm:$0xf0]  ;;  %v2278_v11 = vor.u32 %v2379_v0, %v2275_v1  ;;  %v2361_v12 = vld [vmem:[%s2760_s7 + $0xe4] sm:$0xf]  ;;  %v2142_v13 = vor.u32 %v2345_v2, %v2139_v5 }
  0x3c   : > { %v2266_v14 = vor.u32 %v2378_v7, %v2265_v6  ;;  %v2203_v15 = vld [vmem:[%s2760_s7 + $0xe8] sm:$0xf0]  ;;  %v2377_v16 = vld [vmem:[%s2760_s7 + $0x164] sm:$0xf]  ;;  %v2343_v18 = vld [vmem:[%s2760_s7 + $0x54] sm:$0xf] }
  0x3d   : > { %970 = vmatpush.bf16.msra.mxu0 %v2114_v28  ;;  %2386 = vmatpush.bf16.msra.mxu2 %v2114_v28  ;;  %v2267_v17 = vld [vmem:[%s2760_s7 + $0x168] sm:$0xf0]  ;;  %v2131_v19 = vld [vmem:[%s2760_s7 + $0x58] sm:$0xf0]  ;;  %v2257_v20 = vld [vmem:[%s2760_s7 + $0x150] sm:$0xf]  ;;  %v2206_v21 = vor.u32 %v2361_v12, %v2203_v15 }
  0x3e   : > { %1059 = vmatpush.bf16.msra.mxu1 %v2178_v29  ;;  %2394 = vmatpush.bf16.msra.mxu3 %v2178_v29  ;;  %v2270_v22 = vor.u32 %v2377_v16, %v2267_v17  ;;  %v2376_v23 = vld [vmem:[%s2760_s7 + $0x154] sm:$0xf0]  ;;  %v2359_v24 = vld [vmem:[%s2760_s7 + $0xd4] sm:$0xf]  ;;  %v2134_v25 = vor.u32 %v2343_v18, %v2131_v19  ;;  %v2195_v27 = vld [vmem:[%s2760_s7 + $0xd8] sm:$0xf0] }
  0x3f   : > { %v2258_v26 = vor.u32 %v2376_v23, %v2257_v20  ;;  %v2375_v28 = vld [vmem:[%s2760_s7 + $0x154] sm:$0xf]  ;;  %v2259_v29 = vld [vmem:[%s2760_s7 + $0x158] sm:$0xf0]  ;;  %v2198_v30 = vor.u32 %v2359_v24, %v2195_v27  ;;  %v1909_v32 = vld [vmem:[#allocation3 + $0x18] sm:$0xf] }
  0x40   : > { %v2262_v31 = vor.u32 %v2375_v28, %v2259_v29  ;;  %v2289_v33 = vld [vmem:[#allocation3 + $0x20] sm:$0xf0]  ;;  %v2288_v36 = vld [vmem:[#allocation3 + $0x1c] sm:$0xf]  ;;  %v1911_v37 = vld [vmem:[#allocation3 + $0x24] sm:$0xf0] }
  0x41   : > { %971 = vmatpush.bf16.msra.mxu0 %v2106_v34  ;;  %2387 = vmatpush.bf16.msra.mxu2 %v2106_v34  ;;  %v2005_v34 = vld [vmem:[#allocation3 + $0xd8] sm:$0xf]  ;;  %v2312_v38 = vld [vmem:[#allocation3 + $0xdc] sm:$0xf]  ;;  %v2007_v39 = vld [vmem:[#allocation3 + $0xe4] sm:$0xf0] }
  0x42   : > { %1060 = vmatpush.bf16.msra.mxu1 %v2170_v35  ;;  %2395 = vmatpush.bf16.msra.mxu3 %v2170_v35  ;;  %v2313_v35 = vld [vmem:[#allocation3 + $0xe0] sm:$0xf0]  ;;  %v2840_v43 = vor.u32 %v2312_v38, %v2007_v39  ;;  %v2123_v45 = vld [vmem:[%s2760_s7 + $0x48] sm:$0xf0]  ;;  %v2249_v46 = vld [vmem:[%s2760_s7 + $0x140] sm:$0xf] }
  0x43   : > { %v2836_v41 = vor.u32 %v2313_v35, %v2005_v34  ;;  %v2341_v44 = vld [vmem:[%s2760_s7 + $0x44] sm:$0xf]  ;;  %v2374_v48 = vld [vmem:[%s2760_s7 + $0x144] sm:$0xf0]  ;;  %v2187_v50 = vld [vmem:[%s2760_s7 + $0xc8] sm:$0xf0] }
  0x44   : > { %v2126_v47 = vor.u32 %v2341_v44, %v2123_v45  ;;  %v2357_v49 = vld [vmem:[%s2760_s7 + $0xc4] sm:$0xf]  ;;  %v2250_v51 = vor.u32 %v2374_v48, %v2249_v46  ;;  %v1921_v56 = vld [vmem:[#allocation3 + $0x30] sm:$0xf]  ;;  %v2292_v57 = vld [vmem:[#allocation3 + $0x38] sm:$0xf0] }
  0x45   : > { %972 = vmatpush.bf16.msra.mxu0 %v2098_v40  ;;  %2388 = vmatpush.bf16.msra.mxu2 %v2098_v40  ;;  %v2834_v40 = vor.u32 %v2289_v33, %v1909_v32  ;;  %v2190_v52 = vor.u32 %v2357_v49, %v2187_v50  ;;  %v2373_v53 = vld [vmem:[%s2760_s7 + $0x144] sm:$0xf]  ;;  %v2316_v59 = vld [vmem:[#allocation3 + $0xf8] sm:$0xf0]  ;;  %v2291_v60 = vld [vmem:[#allocation3 + $0x34] sm:$0xf]  ;;  %v2854_v0 = vor.u32 %v2292_v57, %v1921_v56 }
  0x46   : > { %1061 = vmatpush.bf16.msra.mxu1 %v2162_v42  ;;  %2396 = vmatpush.bf16.msra.mxu3 %v2162_v42  ;;  %v2838_v42 = vor.u32 %v2288_v36, %v1911_v37  ;;  %v1923_v61 = vld [vmem:[#allocation3 + $0x3c] sm:$0xf0]  ;;  %v2339_v6 = vld [vmem:[%s2760_s7 + $0x34] sm:$0xf]  ;;  %v2115_v7 = vld [vmem:[%s2760_s7 + $0x38] sm:$0xf0] }
  0x47   : > { %v2858_v2 = vor.u32 %v2291_v60, %v1923_v61  ;;  %v2372_v12 = vld [vmem:[%s2760_s7 + $0x134] sm:$0xf0]  ;;  %v2371_v17 = vld [vmem:[%s2760_s7 + $0x134] sm:$0xf]  ;;  %v2243_v18 = vld [vmem:[%s2760_s7 + $0x138] sm:$0xf0] }
  0x48   : > { %v2246_v19 = vor.u32 %v2371_v17, %v2243_v18  ;;  %v1933_v20 = vld [vmem:[#allocation3 + $0x48] sm:$0xf]  ;;  %v2319_v23 = vld [vmem:[#allocation3 + $0x110] sm:$0xf0]  ;;  %v2294_v24 = vld [vmem:[#allocation3 + $0x4c] sm:$0xf] }
  0x49   : > { %973 = vmatpush.bf16.msra.mxu0 %v2090_v54  ;;  %2389 = vmatpush.bf16.msra.mxu2 %v2090_v54  ;;  %v2251_v54 = vld [vmem:[%s2760_s7 + $0x148] sm:$0xf0]  ;;  %v2031_v27 = vld [vmem:[#allocation3 + $0x114] sm:$0xf0]  ;;  %v2337_v32 = vld [vmem:[%s2760_s7 + $0x24] sm:$0xf] }
  0x4a   : > { %1062 = vmatpush.bf16.msra.mxu1 %v2154_v58  ;;  %2397 = vmatpush.bf16.msra.mxu3 %v2154_v58  ;;  %v2254_v55 = vor.u32 %v2373_v53, %v2251_v54  ;;  %v2017_v58 = vld [vmem:[#allocation3 + $0xf0] sm:$0xf]  ;;  %v2107_v33 = vld [vmem:[%s2760_s7 + $0x28] sm:$0xf0]  ;;  %v2233_v34 = vld [vmem:[%s2760_s7 + $0x120] sm:$0xf] }
  0x4b   : > { %v2856_v1 = vor.u32 %v2316_v59, %v2017_v58  ;;  %v2110_v35 = vor.u32 %v2337_v32, %v2107_v33  ;;  %v2370_v36 = vld [vmem:[%s2760_s7 + $0x124] sm:$0xf0]  ;;  %v2353_v37 = vld [vmem:[%s2760_s7 + $0xa4] sm:$0xf]  ;;  %v2171_v38 = vld [vmem:[%s2760_s7 + $0xa8] sm:$0xf0] }
  0x4c   : > { %974 = vmatmul.bf16.vlgmr.msra.gmra.mxu0 %v2807_v3  ;;  %1014 = vmatmul.bf16.vlgmr.msra.gmra.mxu2 %v2809_v4  ;;  %v2234_v39 = vor.u32 %v2370_v36, %v2233_v34  ;;  %v2174_v44 = vor.u32 %v2353_v37, %v2171_v38  ;;  %v2369_v45 = vld [vmem:[%s2760_s7 + $0x124] sm:$0xf]  ;;  %v2235_v46 = vld [vmem:[%s2760_s7 + $0x128] sm:$0xf0]  ;;  %v1945_v48 = vld [vmem:[#allocation3 + $0x60] sm:$0xf] }
  0x4d   : > { %1144 = vmatpush.bf16.msrb.mxu2 %v2274_v63  ;;  %1063 = vmatmul.bf16.vlgmr.msra.gmra.mxu1 %v2814_v8  ;;  %v2019_v63 = vld [vmem:[#allocation3 + $0xfc] sm:$0xf0]  ;;  %v2298_v49 = vld [vmem:[#allocation3 + $0x68] sm:$0xf0]  ;;  %v1947_v53 = vld [vmem:[#allocation3 + $0x6c] sm:$0xf0] }
  0x4e   : > { %1233 = vmatpush.bf16.msrb.mxu3 %v2150_v62  ;;  %1322 = vmatpush.bf16.msrb.mxu0 %v2214_v10  ;;  %v2315_v62 = vld [vmem:[#allocation3 + $0xf4] sm:$0xf]  ;;  %v2241_v10 = vld [vmem:[%s2760_s7 + $0x130] sm:$0xf]  ;;  %v2041_v50 = vld [vmem:[#allocation3 + $0x120] sm:$0xf]  ;;  %v2894_v56 = vor.u32 %v2298_v49, %v1945_v48 }
  0x4f   : > { %1103 = vmatmul.bf16.vlgmr.msra.gmra.mxu3 %v2816_v9  ;;  %1411 = vmatpush.bf16.msrb.mxu1 %v2278_v11  ;;  %v2860_v5 = vor.u32 %v2315_v62, %v2019_v63  ;;  %v2118_v11 = vor.u32 %v2339_v6, %v2115_v7  ;;  %v2242_v15 = vor.u32 %v2372_v12, %v2241_v10  ;;  %v2321_v54 = vld [vmem:[#allocation3 + $0x124] sm:$0xf]  ;;  %v2335_v60 = vld [vmem:[%s2760_s7 + $0x14] sm:$0xf]  ;;  %v2099_v61 = vld [vmem:[%s2760_s7 + $0x18] sm:$0xf0] }
  0x50   : > { %v2225_v62 = vld [vmem:[%s2760_s7 + $0x110] sm:$0xf]  ;;  %v2102_v63 = vor.u32 %v2335_v60, %v2099_v61  ;;  %v2368_v6 = vld [vmem:[%s2760_s7 + $0x114] sm:$0xf0]  ;;  %v2351_v7 = vld [vmem:[%s2760_s7 + $0x94] sm:$0xf] }
  0x51   : > { %1145 = vmatpush.bf16.msrb.mxu2 %v2266_v14  ;;  %v2179_v14 = vld [vmem:[%s2760_s7 + $0xb8] sm:$0xf0]  ;;  %v2301_v17 = vld [vmem:[#allocation3 + $0x80] sm:$0xf0]  ;;  %v2053_v18 = vld [vmem:[#allocation3 + $0x138] sm:$0xf] }
  0x52   : > { %1234 = vmatpush.bf16.msrb.mxu3 %v2142_v13  ;;  %1323 = vmatpush.bf16.msrb.mxu0 %v2206_v21  ;;  %v2355_v13 = vld [vmem:[%s2760_s7 + $0xb4] sm:$0xf]  ;;  %v2163_v10 = vld [vmem:[%s2760_s7 + $0x98] sm:$0xf0]  ;;  %v2333_v32 = vld [vmem:[%s2760_s7 + $0x4] sm:$0xf] }
  0x53   : > { %1412 = vmatpush.bf16.msrb.mxu1 %v2270_v22  ;;  %v2182_v16 = vor.u32 %v2355_v13, %v2179_v14  ;;  %v2295_v21 = vld [vmem:[#allocation3 + $0x50] sm:$0xf0]  ;;  %v2029_v22 = vld [vmem:[#allocation3 + $0x108] sm:$0xf]  ;;  %v2166_v12 = vor.u32 %v2351_v7, %v2163_v10  ;;  %v2227_v14 = vld [vmem:[%s2760_s7 + $0x118] sm:$0xf0] }
  0x54   : > { %v2874_v28 = vor.u32 %v2295_v21, %v1933_v20  ;;  %v2876_v29 = vor.u32 %v2319_v23, %v2029_v22  ;;  %v2367_v13 = vld [vmem:[%s2760_s7 + $0x114] sm:$0xf]  ;;  %v2300_v20 = vld [vmem:[#allocation3 + $0x7c] sm:$0xf]  ;;  %v1959_v21 = vld [vmem:[#allocation3 + $0x84] sm:$0xf0] }
  0x55   : > { %1146 = vmatpush.bf16.msrb.mxu2 %v2258_v26  ;;  %v2318_v26 = vld [vmem:[#allocation3 + $0x10c] sm:$0xf]  ;;  %v2324_v22 = vld [vmem:[#allocation3 + $0x13c] sm:$0xf]  ;;  %v2055_v23 = vld [vmem:[#allocation3 + $0x144] sm:$0xf0] }
  0x56   : > { %1235 = vmatpush.bf16.msrb.mxu3 %v2134_v25  ;;  %1324 = vmatpush.bf16.msrb.mxu0 %v2198_v30  ;;  %v1935_v25 = vld [vmem:[#allocation3 + $0x54] sm:$0xf0]  ;;  %v2091_v33 = vld [vmem:[%s2760_s7 + $0x8] sm:$0xf0]  ;;  %v2217_v34 = vld [vmem:[%s2760_s7 + $0x100] sm:$0xf] }
  0x57   : > { %1413 = vmatpush.bf16.msrb.mxu1 %v2262_v31  ;;  %v2878_v30 = vor.u32 %v2294_v24, %v1935_v25  ;;  %v2880_v31 = vor.u32 %v2318_v26, %v2031_v27  ;;  %v2918_v26 = vor.u32 %v2300_v20, %v1959_v21  ;;  %v2920_v27 = vor.u32 %v2324_v22, %v2055_v23  ;;  %v2366_v36 = vld [vmem:[%s2760_s7 + $0x104] sm:$0xf0]  ;;  %v2349_v37 = vld [vmem:[%s2760_s7 + $0x84] sm:$0xf]  ;;  %v2155_v38 = vld [vmem:[%s2760_s7 + $0x88] sm:$0xf0] }
  0x58   : > { %v1969_v48 = vld [vmem:[#allocation3 + $0x90] sm:$0xf]  ;;  %v2304_v49 = vld [vmem:[#allocation3 + $0x98] sm:$0xf0]  ;;  %v2307_v7 = vld [vmem:[#allocation3 + $0xb0] sm:$0xf0] }
  0x59   : > { %1147 = vmatpush.bf16.msrb.mxu2 %v2250_v51  ;;  %v2322_v51 = vld [vmem:[#allocation3 + $0x128] sm:$0xf0]  ;;  %v2934_v60 = vor.u32 %v2304_v49, %v1969_v48  ;;  %v2077_v10 = vld [vmem:[#allocation3 + $0x168] sm:$0xf]  ;;  %v2287_v21 = vld [vmem:[#allocation3 + $0x10] sm:$0xf0] }
  0x5a   : > { %1236 = vmatpush.bf16.msrb.mxu3 %v2126_v47  ;;  %1325 = vmatpush.bf16.msrb.mxu0 %v2190_v52  ;;  %v2238_v47 = vor.u32 %v2369_v45, %v2235_v46  ;;  %v2297_v52 = vld [vmem:[#allocation3 + $0x64] sm:$0xf]  ;;  %v2896_v57 = vor.u32 %v2322_v51, %v2041_v50  ;;  %v2219_v46 = vld [vmem:[%s2760_s7 + $0x108] sm:$0xf0]  ;;  %v2065_v50 = vld [vmem:[#allocation3 + $0x150] sm:$0xf] }
  0x5b   : > { %1414 = vmatpush.bf16.msrb.mxu1 %v2254_v55  ;;  %v2043_v55 = vld [vmem:[#allocation3 + $0x12c] sm:$0xf0]  ;;  %v2898_v58 = vor.u32 %v2297_v52, %v1947_v53  ;;  %v2365_v45 = vld [vmem:[%s2760_s7 + $0x104] sm:$0xf]  ;;  %v2328_v51 = vld [vmem:[#allocation3 + $0x158] sm:$0xf0] }
  0x5c   : > { %979 = vmatmul.bf16.gmra.mxu0 %v2834_v40  ;;  %1019 = vmatmul.bf16.gmra.mxu2 %v2836_v41  ;;  %v2900_v59 = vor.u32 %v2321_v54, %v2043_v55  ;;  %v2303_v52 = vld [vmem:[#allocation3 + $0x94] sm:$0xf]  ;;  %v1971_v53 = vld [vmem:[#allocation3 + $0x9c] sm:$0xf0]  ;;  %v2936_v61 = vor.u32 %v2328_v51, %v2065_v50  ;;  %v1905_v20 = vld [vmem:[#allocation3 + $0x8] sm:$0xf] }
  0x5d   : > { %1068 = vmatmul.bf16.gmra.mxu1 %v2838_v42  ;;  %1148 = vmatpush.bf16.msrb.mxu2 %v2242_v15  ;;  %v2230_v15 = vor.u32 %v2367_v13, %v2227_v14  ;;  %v2327_v54 = vld [vmem:[#allocation3 + $0x154] sm:$0xf]  ;;  %v2067_v55 = vld [vmem:[#allocation3 + $0x15c] sm:$0xf0]  ;;  %v1983_v13 = vld [vmem:[#allocation3 + $0xb4] sm:$0xf0]  ;;  %v1906_v22 = vor.u32 %v2287_v21, %v1905_v20 }
  0x5e   : > { %1237 = vmatpush.bf16.msrb.mxu3 %v2118_v11  ;;  %1326 = vmatpush.bf16.msrb.mxu0 %v2182_v16  ;;  %v2226_v11 = vor.u32 %v2368_v6, %v2225_v62  ;;  %v1957_v16 = vld [vmem:[#allocation3 + $0x78] sm:$0xf]  ;;  %v2938_v62 = vor.u32 %v2303_v52, %v1971_v53  ;;  %v1981_v6 = vld [vmem:[#allocation3 + $0xa8] sm:$0xf]  ;;  %v2330_v14 = vld [vmem:[#allocation3 + $0x16c] sm:$0xf] }
  0x5f   : > { %1108 = vmatmul.bf16.gmra.mxu3 %v2840_v43  ;;  %1415 = vmatpush.bf16.msrb.mxu1 %v2246_v19  ;;  %v2325_v19 = vld [vmem:[#allocation3 + $0x140] sm:$0xf0]  ;;  %v2914_v24 = vor.u32 %v2301_v17, %v1957_v16  ;;  %v2946_v16 = vor.u32 %v2307_v7, %v1981_v6  ;;  %v1929_v7 = vld [vmem:[#allocation3 + $0x38] sm:$0xf]  ;;  %s3042_s19 = scalar_lea.vmem [#allocation8], %s1894_s17  ;;  %s2381_s24 = sshll.u32 %s2619_s12, 4 }
  0x60   : > { %v2916_v25 = vor.u32 %v2325_v19, %v2053_v18  ;;  %s1774_s21 = scalar_lea.hbm %s3194_s2, %s2381_s24  ;;  %s1775_s22 = sshll.u32 %s3042_s19, 4  ;;  %s1776_s22 = int_to_ptr.vmem [resolvable:$true] %s1775_s22 }
  0x61   : > { %1149 = vmatpush.bf16.msrb.mxu2 %v2234_v39  ;;  %v2218_v39 = vor.u32 %v2366_v36, %v2217_v34  ;;  %s1777_s23 = sshll.u32 %s1774_s21, 4  ;;  %s1760_s12 = scalar_lea.sflag [#allocation5], %s2756_s30  ;;  %s1778_s23 = int_to_ptr.hbm [resolvable:$true] %s1777_s23 }
  0x62   : > { %1238 = vmatpush.bf16.msrb.mxu3 %v2110_v35  ;;  %1327 = vmatpush.bf16.msrb.mxu0 %v2174_v44  ;;  %v2094_v35 = vor.u32 %v2333_v32, %v2091_v33  ;;  %v2158_v44 = vor.u32 %v2349_v37, %v2155_v38  ;;  %s2555_s25 = sshra.s32 %s1778_s23, 4  ;;  %s2561_s28 = scalar_lea.hbm %s3194_s2, 1024  ;;  %s2556_s25 = int_to_ptr.hbm [resolvable:$true] %s2555_s25 }
  0x63   : > { %1416 = vmatpush.bf16.msrb.mxu1 %v2238_v47  ;;  %v2222_v47 = vor.u32 %v2365_v45, %v2219_v46  ;;  %v2290_v45 = vld [vmem:[#allocation3 + $0x28] sm:$0xf0]  ;;  %s2557_s18 = scalar_lea.hbm %s2556_s25, 512  ;;  %p2562_p10 = scmp.lt.s32.totalorder %s2556_s25, %s3194_s2 }
  0x64   : > { %p2558_p1 = scmp.ne.s32.totalorder %s2556_s25, %s2557_s18  ;;  %p2563_p12 = scmp.lt.s32.totalorder %s2561_s28, %s2557_s18 }
  0x65   : > { %1150 = vmatpush.bf16.msrb.mxu2 %v2226_v11  ;;  %v2331_v11 = vld [vmem:[#allocation3 + $0x170] sm:$0xf0] }
  0x66   : > { %1239 = vmatpush.bf16.msrb.mxu3 %v2102_v63  ;;  %1328 = vmatpush.bf16.msrb.mxu0 %v2166_v12  ;;  %v2940_v63 = vor.u32 %v2327_v54, %v2067_v55  ;;  %v2306_v12 = vld [vmem:[#allocation3 + $0xac] sm:$0xf]  ;;  %v2948_v17 = vor.u32 %v2331_v11, %v2077_v10  ;;  %v2293_v10 = vld [vmem:[#allocation3 + $0x40] sm:$0xf0]  ;;  %p2559_p4 = pnand %p2558_p1, %p2732_p5  ;;  %p2564_p13 = por %p2563_p12, %p2562_p10 }
  0x67   : > { %1417 = vmatpush.bf16.msrb.mxu1 %v2230_v15  ;;  %v2079_v15 = vld [vmem:[#allocation3 + $0x174] sm:$0xf0]  ;;  %v2950_v18 = vor.u32 %v2306_v12, %v1983_v13  ;;  %v1930_v13 = vor.u32 %v2293_v10, %v1929_v7  ;;  %v2299_v7 = vld [vmem:[#allocation3 + $0x70] sm:$0xf0] }
  0x68   : > { %v2952_v19 = vor.u32 %v2330_v14, %v2079_v15  ;;  %p2560_p8 = pneg %p2559_p4 }
  0x69   : > { %1151 = vmatpush.bf16.msrb.mxu2 %v2218_v39 }
  0x6a   : > { %1240 = vmatpush.bf16.msrb.mxu3 %v2094_v35  ;;  %1329 = vmatpush.bf16.msrb.mxu0 %v2158_v44  ;;  %v1917_v44 = vld [vmem:[#allocation3 + $0x20] sm:$0xf]  ;;  %p2565_p0 = pnand %p2564_p13, %p2560_p8 }
  0x6b   : > { %1418 = vmatpush.bf16.msrb.mxu1 %v2222_v47  ;;  %v1918_v48 = vor.u32 %v2290_v45, %v1917_v44 }
  0x6c   : > { %984 = vmatmul.bf16.gmra.mxu0 %v2854_v0  ;;  %1024 = vmatmul.bf16.gmra.mxu2 %v2856_v1 }
  0x6d   : > { %1073 = vmatmul.bf16.gmra.mxu1 %v2858_v2 }
  0x6f   : > { %1113 = vmatmul.bf16.gmra.mxu3 %v2860_v5 }
  0x7c   : > { %989 = vmatmul.bf16.gmra.mxu0 %v2874_v28  ;;  %1029 = vmatmul.bf16.gmra.mxu2 %v2876_v29 }
  0x7d   : > { %1078 = vmatmul.bf16.gmra.mxu1 %v2878_v30 }
  0x7f   : > { %1118 = vmatmul.bf16.gmra.mxu3 %v2880_v31 }
  0x8c   : > { %994 = vmatmul.bf16.gmra.mxu0 %v2894_v56  ;;  %1034 = vmatmul.bf16.gmra.mxu2 %v2896_v57 }
  0x8d   : > { %1083 = vmatmul.bf16.gmra.mxu1 %v2898_v58 }
  0x8f   : > { %1123 = vmatmul.bf16.gmra.mxu3 %v2900_v59 }
  0x9c   : > { %999 = vmatmul.bf16.gmra.mxu0 %v2914_v24  ;;  %1039 = vmatmul.bf16.gmra.mxu2 %v2916_v25 }
  0x9d   : > { %1088 = vmatmul.bf16.gmra.mxu1 %v2918_v26 }
  0x9f   : > { %1128 = vmatmul.bf16.gmra.mxu3 %v2920_v27 }
  0xac   : > { %1004 = vmatmul.bf16.gmra.mxu0 %v2934_v60  ;;  %1044 = vmatmul.bf16.gmra.mxu2 %v2936_v61 }
  0xad   : > { %1093 = vmatmul.bf16.gmra.mxu1 %v2938_v62 }
  0xaf   : > { %1133 = vmatmul.bf16.gmra.mxu3 %v2940_v63 }
  0xbc   : > { %1009 = vmatmul.bf16.gmra.mxu0 %v2946_v16  ;;  %1049 = vmatmul.bf16.gmra.mxu2 %v2948_v17 }
  0xbd   : > { %1098 = vmatmul.bf16.gmra.mxu1 %v2950_v18 }
  0xbf   : > { %1138 = vmatmul.bf16.gmra.mxu3 %v2952_v19 }
  0xc9   : > { %v975_v23 = vpop.f32.mrf.mxu0 }
  0xca   : > { %v1064_v32 = vpop.f32.mrf.mxu1 }
  0xcb   : > { %v2958_v33 = vadd.f32 %v1064_v32, %v975_v23 }
  0xcc   : > { %1152 = vmatmul.bf16.vlgmr.msrb.gmra.mxu2 %v1906_v22  ;;  %1330 = vmatmul.bf16.vlgmr.msrb.gmra.mxu0 %v2814_v8 }
  0xcd   : > { %1419 = vmatmul.bf16.vlgmr.msrb.gmra.mxu1 %v1906_v22 }
  0xcf   : > { %1241 = vmatmul.bf16.vlgmr.msrb.gmra.mxu3 %v2807_v3  ;;  %v1015_v34 = vpop.f32.mrf.mxu2 }
  0xd1   : > { %v977_v37 = vpop.f32.mrf.mxu0 }
  0xd2   : > { %v1104_v35 = vpop.f32.mrf.mxu3  ;;  %v1066_v38 = vpop.f32.mrf.mxu1 }
  0xd3   : > { %v2962_v36 = vadd.f32 %v1104_v35, %v1015_v34  ;;  %v2964_v39 = vadd.f32 %v1066_v38, %v977_v37  ;;  %v1941_v35 = vld [vmem:[#allocation3 + $0x50] sm:$0xf]  ;;  %v2296_v37 = vld [vmem:[#allocation3 + $0x58] sm:$0xf0] }
  0xd4   : > { %v1942_v45 = vor.u32 %v2296_v37, %v1941_v35  ;;  %v1965_v37 = vld [vmem:[#allocation3 + $0x80] sm:$0xf] }
  0xd7   : > { %v1017_v46 = vpop.f32.mrf.mxu2 }
  0xd9   : > { %v980_v50 = vpop.f32.mrf.mxu0 }
  0xda   : > { %v1106_v47 = vpop.f32.mrf.mxu3  ;;  %v1069_v8 = vpop.f32.mrf.mxu1 }
  0xdb   : > { %v2966_v49 = vadd.f32 %v1106_v47, %v1017_v46  ;;  %v2968_v51 = vadd.f32 %v1069_v8, %v980_v50 }
  0xdc   : > { %1157 = vmatmul.bf16.gmra.mxu2 %v1918_v48  ;;  %1335 = vmatmul.bf16.gmra.mxu0 %v2838_v42 }
  0xdd   : > { %1424 = vmatmul.bf16.gmra.mxu1 %v1918_v48 }
  0xdf   : > { %1246 = vmatmul.bf16.gmra.mxu3 %v2834_v40  ;;  %v1020_v3 = vpop.f32.mrf.mxu2 }
  0xe1   : > { %v982_v54 = vpop.f32.mrf.mxu0 }
  0xe2   : > { %v1109_v52 = vpop.f32.mrf.mxu3  ;;  %v1071_v55 = vpop.f32.mrf.mxu1 }
  0xe3   : > { %v2972_v53 = vadd.f32 %v1109_v52, %v1020_v3  ;;  %v2974_v6 = vadd.f32 %v1071_v55, %v982_v54  ;;  %v1953_v55 = vld [vmem:[#allocation3 + $0x68] sm:$0xf] }
  0xe7   : > { %v1022_v11 = vpop.f32.mrf.mxu2 }
  0xe9   : > { %v985_v15 = vpop.f32.mrf.mxu0 }
  0xea   : > { %v1111_v12 = vpop.f32.mrf.mxu3  ;;  %v1074_v42 = vpop.f32.mrf.mxu1 }
  0xeb   : > { %v2976_v14 = vadd.f32 %v1111_v12, %v1022_v11  ;;  %v2978_v20 = vadd.f32 %v1074_v42, %v985_v15  ;;  %v1954_v12 = vor.u32 %v2299_v7, %v1953_v55 }
  0xec   : > { %1162 = vmatmul.bf16.gmra.mxu2 %v1930_v13  ;;  %1340 = vmatmul.bf16.gmra.mxu0 %v2858_v2 }
  0xed   : > { %1429 = vmatmul.bf16.gmra.mxu1 %v1930_v13 }
  0xef   : > { %1251 = vmatmul.bf16.gmra.mxu3 %v2854_v0  ;;  %v1025_v40 = vpop.f32.mrf.mxu2 }
  0xf1   : > { %v987_v23 = vpop.f32.mrf.mxu0 }
  0xf2   : > { %v1114_v21 = vpop.f32.mrf.mxu3  ;;  %v1076_v32 = vpop.f32.mrf.mxu1 }
  0xf3   : > { %v2982_v22 = vadd.f32 %v1114_v21, %v1025_v40  ;;  %v2984_v34 = vadd.f32 %v1076_v32, %v987_v23 }
  0xf7   : > { %v1027_v38 = vpop.f32.mrf.mxu2 }
  0xf9   : > { %v990_v47 = vpop.f32.mrf.mxu0 }
  0xfa   : > { %v1116_v44 = vpop.f32.mrf.mxu3  ;;  %v1079_v2 = vpop.f32.mrf.mxu1 }
  0xfb   : > { %v2986_v46 = vadd.f32 %v1116_v44, %v1027_v38  ;;  %v2988_v48 = vadd.f32 %v1079_v2, %v990_v47  ;;  %v2302_v38 = vld [vmem:[#allocation3 + $0x88] sm:$0xf0] }
  0xfc   : > { %1167 = vmatmul.bf16.gmra.mxu2 %v1942_v45  ;;  %1345 = vmatmul.bf16.gmra.mxu0 %v2878_v30  ;;  %v1966_v47 = vor.u32 %v2302_v38, %v1965_v37 }
  0xfd   : > { %1434 = vmatmul.bf16.gmra.mxu1 %v1942_v45 }
  0xff   : > { %1256 = vmatmul.bf16.gmra.mxu3 %v2874_v28  ;;  %v1030_v0 = vpop.f32.mrf.mxu2 }
 0x101   : > { %v992_v3 = vpop.f32.mrf.mxu0 }
 0x102   : > { %v1119_v50 = vpop.f32.mrf.mxu3  ;;  %v1081_v52 = vpop.f32.mrf.mxu1 }
 0x103   : > { %v2992_v8 = vadd.f32 %v1119_v50, %v1030_v0  ;;  %v2994_v54 = vadd.f32 %v1081_v52, %v992_v3 }
 0x107   : > { %v1032_v10 = vpop.f32.mrf.mxu2 }
 0x109   : > { %v995_v15 = vpop.f32.mrf.mxu0 }
 0x10a   : > { %v1121_v11 = vpop.f32.mrf.mxu3  ;;  %v1084_v30 = vpop.f32.mrf.mxu1 }
 0x10b   : > { %v2996_v13 = vadd.f32 %v1121_v11, %v1032_v10  ;;  %v2998_v42 = vadd.f32 %v1084_v30, %v995_v15  ;;  %v1977_v11 = vld [vmem:[#allocation3 + $0x98] sm:$0xf] }
 0x10c   : > { %1172 = vmatmul.bf16.gmra.mxu2 %v1954_v12  ;;  %1350 = vmatmul.bf16.gmra.mxu0 %v2898_v58 }
 0x10d   : > { %1439 = vmatmul.bf16.gmra.mxu1 %v1954_v12  ;;  %v2305_v12 = vld [vmem:[#allocation3 + $0xa0] sm:$0xf0] }
 0x10f   : > { %1261 = vmatmul.bf16.gmra.mxu3 %v2894_v56  ;;  %v1035_v28 = vpop.f32.mrf.mxu2 }
 0x111   : > { %v997_v23 = vpop.f32.mrf.mxu0 }
 0x112   : > { %v1124_v40 = vpop.f32.mrf.mxu3  ;;  %v1086_v32 = vpop.f32.mrf.mxu1 }
 0x113   : > { %v3002_v21 = vadd.f32 %v1124_v40, %v1035_v28  ;;  %v3004_v35 = vadd.f32 %v1086_v32, %v997_v23  ;;  %v1978_v28 = vor.u32 %v2305_v12, %v1977_v11 }
 0x117   : > { %v1037_v44 = vpop.f32.mrf.mxu2 }
 0x119   : > { %v1000_v0 = vpop.f32.mrf.mxu0 }
 0x11a   : > { %v1126_v45 = vpop.f32.mrf.mxu3  ;;  %v1089_v58 = vpop.f32.mrf.mxu1 }
 0x11b   : > { %v3006_v2 = vadd.f32 %v1126_v45, %v1037_v44  ;;  %v3008_v50 = vadd.f32 %v1089_v58, %v1000_v0  ;;  %v1989_v0 = vld [vmem:[#allocation3 + $0xb0] sm:$0xf]  ;;  %v2308_v58 = vld [vmem:[#allocation3 + $0xb8] sm:$0xf0] }
 0x11c   : > { %1177 = vmatmul.bf16.gmra.mxu2 %v1966_v47  ;;  %1355 = vmatmul.bf16.gmra.mxu0 %v2918_v26 }
 0x11d   : > { %1444 = vmatmul.bf16.gmra.mxu1 %v1966_v47 }
 0x11f   : > { %1266 = vmatmul.bf16.gmra.mxu3 %v2914_v24  ;;  %v1040_v56 = vpop.f32.mrf.mxu2 }
 0x121   : > { %v1002_v55 = vpop.f32.mrf.mxu0 }
 0x122   : > { %v1129_v3 = vpop.f32.mrf.mxu3  ;;  %v1091_v7 = vpop.f32.mrf.mxu1 }
 0x123   : > { %v3012_v52 = vadd.f32 %v1129_v3, %v1040_v56  ;;  %v3014_v10 = vadd.f32 %v1091_v7, %v1002_v55  ;;  %v1990_v55 = vor.u32 %v2308_v58, %v1989_v0 }
 0x127   : > { %v1042_v15 = vpop.f32.mrf.mxu2 }
 0x129   : > { %v1005_v23 = vpop.f32.mrf.mxu0 }
 0x12a   : > { %v1131_v30 = vpop.f32.mrf.mxu3  ;;  %v1094_v26 = vpop.f32.mrf.mxu1 }
 0x12b   : > { %v3016_v40 = vadd.f32 %v1131_v30, %v1042_v15  ;;  %v3018_v32 = vadd.f32 %v1094_v26, %v1005_v23 }
 0x12c   : > { %1182 = vmatmul.bf16.gmra.mxu2 %v1978_v28  ;;  %1360 = vmatmul.bf16.gmra.mxu0 %v2938_v62 }
 0x12d   : > { %1449 = vmatmul.bf16.gmra.mxu1 %v1978_v28 }
 0x12f   : > { %1271 = vmatmul.bf16.gmra.mxu3 %v2934_v60  ;;  %v1045_v24 = vpop.f32.mrf.mxu2 }
 0x131   : > { %v1007_v44 = vpop.f32.mrf.mxu0 }
 0x132   : > { %v1134_v37 = vpop.f32.mrf.mxu3  ;;  %v1096_v45 = vpop.f32.mrf.mxu1 }
 0x133   : > { %v3022_v38 = vadd.f32 %v1134_v37, %v1045_v24  ;;  %v3024_v47 = vadd.f32 %v1096_v45, %v1007_v44  ;;  %v2001_v24 = vld [vmem:[#allocation3 + $0xc8] sm:$0xf]  ;;  %v2311_v37 = vld [vmem:[#allocation3 + $0xd0] sm:$0xf0] }
 0x134   : > { %v2002_v0 = vor.u32 %v2311_v37, %v2001_v24 }
 0x137   : > { %v1047_v56 = vpop.f32.mrf.mxu2 }
 0x139   : > { %v1010_v11 = vpop.f32.mrf.mxu0 }
 0x13a   : > { %v1136_v3 = vpop.f32.mrf.mxu3  ;;  %v1099_v62 = vpop.f32.mrf.mxu1 }
 0x13b   : > { %v3026_v7 = vadd.f32 %v1136_v3, %v1047_v56  ;;  %v3028_v12 = vadd.f32 %v1099_v62, %v1010_v11 }
 0x13c   : > { %1187 = vmatmul.bf16.gmra.mxu2 %v1990_v55  ;;  %1365 = vmatmul.bf16.gmra.mxu0 %v2950_v18 }
 0x13d   : > { %1454 = vmatmul.bf16.gmra.mxu1 %v1990_v55 }
 0x13f   : > { %1276 = vmatmul.bf16.gmra.mxu3 %v2946_v16  ;;  %v1050_v60 = vpop.f32.mrf.mxu2 }
 0x141   : > { %v1012_v28 = vpop.f32.mrf.mxu0 }
 0x142   : > { %v1139_v15 = vpop.f32.mrf.mxu3  ;;  %v1101_v23 = vpop.f32.mrf.mxu1 }
 0x143   : > { %v3032_v30 = vadd.f32 %v1139_v15, %v1050_v60  ;;  %v3034_v26 = vadd.f32 %v1101_v23, %v1012_v28  ;;  %v2314_v28 = vld [vmem:[#allocation3 + $0xe8] sm:$0xf0] }
 0x147   : > { %v1052_v44 = vpop.f32.mrf.mxu2 }
 0x149   : > { %v1331_v18 = vpop.f32.mrf.mxu0 }
 0x14a   : > { %v1141_v45 = vpop.f32.mrf.mxu3  ;;  %v1420_v56 = vpop.f32.mrf.mxu1 }
 0x14b   : > { %v3036_v58 = vadd.f32 %v1141_v45, %v1052_v44 }
 0x14c   : > { %1192 = vmatmul.bf16.gmra.mxu2 %v2002_v0  ;;  %1370 = vmatmul.bf16.gmra.mxu0 %v2816_v9  ;;  %v2013_v9 = vld [vmem:[#allocation3 + $0xe0] sm:$0xf] }
 0x14d   : > { %1459 = vmatmul.bf16.gmra.mxu1 %v2002_v0 }
 0x14f   : > { %1281 = vmatmul.bf16.gmra.mxu3 %v2809_v4  ;;  %v1153_v16 = vpop.f32.mrf.mxu2 }
 0x150   : > { %v1154_v3 = vadd.f32 %v1153_v16, %v2958_v33  ;;  %v2014_v33 = vor.u32 %v2314_v28, %v2013_v9 }
 0x151   : > { %v1333_v62 = vpop.f32.mrf.mxu0 }
 0x152   : > { %v1242_v55 = vpop.f32.mrf.mxu3  ;;  %1695 = vst [vmem:[%s3042_s19] sm:$0xff] %v1154_v3  ;;  %v1422_v60 = vpop.f32.mrf.mxu1 }
 0x153   : > { %v1332_v11 = vadd.f32 %v1331_v18, %v1242_v55 }
 0x155   : > { %v1421_v15 = vadd.f32 %v1420_v56, %v1332_v11 }
 0x157   : > { %1696 = vst [vmem:[%s3042_s19 + $0x8] sm:$0xff] %v1421_v15  ;;  %v1155_v4 = vpop.f32.mrf.mxu2 }
 0x158   : > { %v1156_v23 = vadd.f32 %v1155_v4, %v2964_v39 }
 0x159   : > { %v1336_v44 = vpop.f32.mrf.mxu0 }
 0x15a   : > { %v1244_v24 = vpop.f32.mrf.mxu3  ;;  %1697 = vst [vmem:[%s3042_s19 + $0x10] sm:$0xff] %v1156_v23  ;;  %v1425_v45 = vpop.f32.mrf.mxu1 }
 0x15b   : > { %v1334_v37 = vadd.f32 %v1333_v62, %v1244_v24  ;;  %v2025_v62 = vld [vmem:[#allocation3 + $0xf8] sm:$0xf] }
 0x15c   : > { %1197 = vmatmul.bf16.gmra.mxu2 %v2014_v33  ;;  %1375 = vmatmul.bf16.gmra.mxu0 %v2840_v43 }
 0x15d   : > { %v1423_v0 = vadd.f32 %v1422_v60, %v1334_v37  ;;  %1464 = vmatmul.bf16.gmra.mxu1 %v2014_v33  ;;  %v2317_v60 = vld [vmem:[#allocation3 + $0x100] sm:$0xf0] }
 0x15f   : > { %1698 = vst [vmem:[%s3042_s19 + $0x18] sm:$0xff] %v1423_v0  ;;  %1286 = vmatmul.bf16.gmra.mxu3 %v2836_v41  ;;  %v1158_v18 = vpop.f32.mrf.mxu2  ;;  %v2026_v41 = vor.u32 %v2317_v60, %v2025_v62 }
 0x160   : > { %v1159_v56 = vadd.f32 %v1158_v18, %v2968_v51  ;;  %v2037_v18 = vld [vmem:[#allocation3 + $0x110] sm:$0xf] }
 0x161   : > { %v1338_v3 = vpop.f32.mrf.mxu0 }
 0x162   : > { %v1247_v39 = vpop.f32.mrf.mxu3  ;;  %1699 = vst [vmem:[%s3042_s19 + $0x20] sm:$0xff] %v1159_v56  ;;  %v1427_v55 = vpop.f32.mrf.mxu1  ;;  %v2320_v56 = vld [vmem:[#allocation3 + $0x118] sm:$0xf0] }
 0x163   : > { %v1337_v16 = vadd.f32 %v1336_v44, %v1247_v39 }
 0x165   : > { %v1426_v11 = vadd.f32 %v1425_v45, %v1337_v16 }
 0x167   : > { %1700 = vst [vmem:[%s3042_s19 + $0x28] sm:$0xff] %v1426_v11  ;;  %v1160_v15 = vpop.f32.mrf.mxu2 }
 0x168   : > { %v1161_v43 = vadd.f32 %v1160_v15, %v2974_v6 }
 0x169   : > { %v1341_v4 = vpop.f32.mrf.mxu0 }
 0x16a   : > { %v1249_v9 = vpop.f32.mrf.mxu3  ;;  %1701 = vst [vmem:[%s3042_s19 + $0x30] sm:$0xff] %v1161_v43  ;;  %v1430_v51 = vpop.f32.mrf.mxu1 }
 0x16b   : > { %v1339_v28 = vadd.f32 %v1338_v3, %v1249_v9 }
 0x16c   : > { %1202 = vmatmul.bf16.gmra.mxu2 %v2026_v41  ;;  %1380 = vmatmul.bf16.gmra.mxu0 %v2860_v5 }
 0x16d   : > { %v1428_v23 = vadd.f32 %v1427_v55, %v1339_v28  ;;  %1469 = vmatmul.bf16.gmra.mxu1 %v2026_v41  ;;  %v2049_v28 = vld [vmem:[#allocation3 + $0x128] sm:$0xf] }
 0x16f   : > { %1702 = vst [vmem:[%s3042_s19 + $0x38] sm:$0xff] %v1428_v23  ;;  %1291 = vmatmul.bf16.gmra.mxu3 %v2856_v1  ;;  %v1163_v24 = vpop.f32.mrf.mxu2  ;;  %v2038_v1 = vor.u32 %v2320_v56, %v2037_v18 }
 0x170   : > { %v1164_v33 = vadd.f32 %v1163_v24, %v2978_v20 }
 0x171   : > { %v1343_v44 = vpop.f32.mrf.mxu0 }
 0x172   : > { %v1252_v6 = vpop.f32.mrf.mxu3  ;;  %1703 = vst [vmem:[%s3042_s19 + $0x40] sm:$0xff] %v1164_v33  ;;  %v1432_v45 = vpop.f32.mrf.mxu1 }
 0x173   : > { %v1342_v37 = vadd.f32 %v1341_v4, %v1252_v6  ;;  %v2323_v4 = vld [vmem:[#allocation3 + $0x130] sm:$0xf0] }
 0x175   : > { %v1431_v0 = vadd.f32 %v1430_v51, %v1342_v37 }
 0x177   : > { %1704 = vst [vmem:[%s3042_s19 + $0x48] sm:$0xff] %v1431_v0  ;;  %v1165_v39 = vpop.f32.mrf.mxu2 }
 0x178   : > { %v1166_v5 = vadd.f32 %v1165_v39, %v2984_v34  ;;  %v2061_v39 = vld [vmem:[#allocation3 + $0x140] sm:$0xf] }
 0x179   : > { %v1346_v55 = vpop.f32.mrf.mxu0 }
 0x17a   : > { %v1254_v16 = vpop.f32.mrf.mxu3  ;;  %1705 = vst [vmem:[%s3042_s19 + $0x50] sm:$0xff] %v1166_v5  ;;  %v1435_v20 = vpop.f32.mrf.mxu1  ;;  %v2326_v5 = vld [vmem:[#allocation3 + $0x148] sm:$0xf0] }
 0x17b   : > { %v1344_v3 = vadd.f32 %v1343_v44, %v1254_v16 }
 0x17c   : > { %1207 = vmatmul.bf16.gmra.mxu2 %v2038_v1  ;;  %1385 = vmatmul.bf16.gmra.mxu0 %v2880_v31 }
 0x17d   : > { %v1433_v11 = vadd.f32 %v1432_v45, %v1344_v3  ;;  %1474 = vmatmul.bf16.gmra.mxu1 %v2038_v1 }
 0x17f   : > { %1706 = vst [vmem:[%s3042_s19 + $0x58] sm:$0xff] %v1433_v11  ;;  %1296 = vmatmul.bf16.gmra.mxu3 %v2876_v29  ;;  %v1168_v62 = vpop.f32.mrf.mxu2  ;;  %v2050_v29 = vor.u32 %v2323_v4, %v2049_v28 }
 0x180   : > { %v1169_v60 = vadd.f32 %v1168_v62, %v2988_v48 }
 0x181   : > { %v1348_v43 = vpop.f32.mrf.mxu0 }
 0x182   : > { %v1257_v34 = vpop.f32.mrf.mxu3  ;;  %1707 = vst [vmem:[%s3042_s19 + $0x60] sm:$0xff] %v1169_v60  ;;  %v1437_v9 = vpop.f32.mrf.mxu1 }
 0x183   : > { %v1347_v15 = vadd.f32 %v1346_v55, %v1257_v34 }
 0x185   : > { %v1436_v41 = vadd.f32 %v1435_v20, %v1347_v15 }
 0x187   : > { %1708 = vst [vmem:[%s3042_s19 + $0x68] sm:$0xff] %v1436_v41  ;;  %v1170_v51 = vpop.f32.mrf.mxu2  ;;  %v2329_v41 = vld [vmem:[#allocation3 + $0x160] sm:$0xf0] }
 0x188   : > { %v1171_v31 = vadd.f32 %v1170_v51, %v2994_v54 }
 0x189   : > { %v1351_v33 = vpop.f32.mrf.mxu0 }
 0x18a   : > { %v1259_v23 = vpop.f32.mrf.mxu3  ;;  %1709 = vst [vmem:[%s3042_s19 + $0x70] sm:$0xff] %v1171_v31  ;;  %v1440_v48 = vpop.f32.mrf.mxu1 }
 0x18b   : > { %v1349_v24 = vadd.f32 %v1348_v43, %v1259_v23 }
 0x18c   : > { %1212 = vmatmul.bf16.gmra.mxu2 %v2050_v29  ;;  %1390 = vmatmul.bf16.gmra.mxu0 %v2900_v59 }
 0x18d   : > { %v1438_v6 = vadd.f32 %v1437_v9, %v1349_v24  ;;  %1479 = vmatmul.bf16.gmra.mxu1 %v2050_v29  ;;  %v2073_v9 = vld [vmem:[#allocation3 + $0x158] sm:$0xf] }
 0x18f   : > { %1710 = vst [vmem:[%s3042_s19 + $0x78] sm:$0xff] %v1438_v6  ;;  %1301 = vmatmul.bf16.gmra.mxu3 %v2896_v57  ;;  %v1173_v37 = vpop.f32.mrf.mxu2  ;;  %v2062_v57 = vor.u32 %v2326_v5, %v2061_v39 }
 0x190   : > { %v1174_v44 = vadd.f32 %v1173_v37, %v2998_v42 }
 0x191   : > { %v1353_v0 = vpop.f32.mrf.mxu0 }
 0x192   : > { %v1262_v54 = vpop.f32.mrf.mxu3  ;;  %1711 = vst [vmem:[%s3042_s19 + $0x80] sm:$0xff] %v1174_v44  ;;  %v1442_v18 = vpop.f32.mrf.mxu1  ;;  %v2085_v44 = vld [vmem:[#allocation3 + $0x170] sm:$0xf] }
 0x193   : > { %v1352_v45 = vadd.f32 %v1351_v33, %v1262_v54  ;;  %v2332_v54 = vld [vmem:[#allocation3 + $0x178] sm:$0xf0] }
 0x195   : > { %v1441_v56 = vadd.f32 %v1440_v48, %v1352_v45 }
 0x197   : > { %1712 = vst [vmem:[%s3042_s19 + $0x88] sm:$0xff] %v1441_v56  ;;  %v1175_v16 = vpop.f32.mrf.mxu2 }
 0x198   : > { %v1176_v59 = vadd.f32 %v1175_v16, %v3004_v35 }
 0x199   : > { %v1356_v55 = vpop.f32.mrf.mxu0 }
 0x19a   : > { %v1264_v1 = vpop.f32.mrf.mxu3  ;;  %1713 = vst [vmem:[%s3042_s19 + $0x90] sm:$0xff] %v1176_v59  ;;  %v1445_v42 = vpop.f32.mrf.mxu1 }
 0x19b   : > { %v1354_v3 = vadd.f32 %v1353_v0, %v1264_v1 }
 0x19c   : > { %1217 = vmatmul.bf16.gmra.mxu2 %v2062_v57  ;;  %1395 = vmatmul.bf16.gmra.mxu0 %v2920_v27 }
 0x19d   : > { %v1443_v20 = vadd.f32 %v1442_v18, %v1354_v3  ;;  %1484 = vmatmul.bf16.gmra.mxu1 %v2062_v57 }
 0x19f   : > { %1714 = vst [vmem:[%s3042_s19 + $0x98] sm:$0xff] %v1443_v20  ;;  %1306 = vmatmul.bf16.gmra.mxu3 %v2916_v25  ;;  %v1178_v11 = vpop.f32.mrf.mxu2  ;;  %v2074_v25 = vor.u32 %v2329_v41, %v2073_v9 }
 0x1a0   : > { %v1179_v62 = vadd.f32 %v1178_v11, %v3008_v50 }
 0x1a1   : > { %v1358_v34 = vpop.f32.mrf.mxu0 }
 0x1a2   : > { %v1267_v35 = vpop.f32.mrf.mxu3  ;;  %1715 = vst [vmem:[%s3042_s19 + $0xa0] sm:$0xff] %v1179_v62  ;;  %v1447_v15 = vpop.f32.mrf.mxu1 }
 0x1a3   : > { %v1357_v60 = vadd.f32 %v1356_v55, %v1267_v35 }
 0x1a5   : > { %v1446_v43 = vadd.f32 %v1445_v42, %v1357_v60 }
 0x1a7   : > { %1716 = vst [vmem:[%s3042_s19 + $0xa8] sm:$0xff] %v1446_v43  ;;  %v1180_v28 = vpop.f32.mrf.mxu2 }
 0x1a8   : > { %v1181_v27 = vadd.f32 %v1180_v28, %v3014_v10 }
 0x1a9   : > { %v1361_v31 = vpop.f32.mrf.mxu0 }
 0x1aa   : > { %v1269_v4 = vpop.f32.mrf.mxu3  ;;  %1717 = vst [vmem:[%s3042_s19 + $0xb0] sm:$0xff] %v1181_v27  ;;  %v1450_v50 = vpop.f32.mrf.mxu1 }
 0x1ab   : > { %v1359_v51 = vadd.f32 %v1358_v34, %v1269_v4 }
 0x1ac   : > { %1222 = vmatmul.bf16.gmra.mxu2 %v2074_v25  ;;  %1400 = vmatmul.bf16.gmra.mxu0 %v2940_v63 }
 0x1ad   : > { %v1448_v23 = vadd.f32 %v1447_v15, %v1359_v51  ;;  %1489 = vmatmul.bf16.gmra.mxu1 %v2074_v25 }
 0x1af   : > { %1718 = vst [vmem:[%s3042_s19 + $0xb8] sm:$0xff] %v1448_v23  ;;  %1311 = vmatmul.bf16.gmra.mxu3 %v2936_v61  ;;  %v1183_v29 = vpop.f32.mrf.mxu2  ;;  %v2086_v61 = vor.u32 %v2332_v54, %v2085_v44 }
 0x1b0   : > { %v1184_v24 = vadd.f32 %v1183_v29, %v3018_v32 }
 0x1b1   : > { %v1363_v48 = vpop.f32.mrf.mxu0 }
 0x1b2   : > { %v1272_v10 = vpop.f32.mrf.mxu3  ;;  %1719 = vst [vmem:[%s3042_s19 + $0xc0] sm:$0xff] %v1184_v24  ;;  %v1452_v6 = vpop.f32.mrf.mxu1 }
 0x1b3   : > { %v1362_v33 = vadd.f32 %v1361_v31, %v1272_v10 }
 0x1b5   : > { %v1451_v37 = vadd.f32 %v1450_v50, %v1362_v33 }
 0x1b7   : > { %1720 = vst [vmem:[%s3042_s19 + $0xc8] sm:$0xff] %v1451_v37  ;;  %v1185_v45 = vpop.f32.mrf.mxu2 }
 0x1b8   : > { %v1186_v63 = vadd.f32 %v1185_v45, %v3024_v47 }
 0x1b9   : > { %v1366_v56 = vpop.f32.mrf.mxu0 }
 0x1ba   : > { %v1274_v0 = vpop.f32.mrf.mxu3  ;;  %1721 = vst [vmem:[%s3042_s19 + $0xd0] sm:$0xff] %v1186_v63  ;;  %v1455_v32 = vpop.f32.mrf.mxu1 }
 0x1bb   : > { %v1364_v18 = vadd.f32 %v1363_v48, %v1274_v0 }
 0x1bc   : > { %1227 = vmatmul.bf16.gmra.mxu2 %v2086_v61  ;;  %1405 = vmatmul.bf16.gmra.mxu0 %v2952_v19 }
 0x1bd   : > { %v1453_v39 = vadd.f32 %v1452_v6, %v1364_v18  ;;  %1494 = vmatmul.bf16.gmra.mxu1 %v2086_v61 }
 0x1bf   : > { %1722 = vst [vmem:[%s3042_s19 + $0xd8] sm:$0xff] %v1453_v39  ;;  %1316 = vmatmul.bf16.gmra.mxu3 %v2948_v17  ;;  %v1188_v5 = vpop.f32.mrf.mxu2 }
 0x1c0   : > { %v1189_v47 = vadd.f32 %v1188_v5, %v3028_v12 }
 0x1c1   : > { %v1368_v1 = vpop.f32.mrf.mxu0 }
 0x1c2   : > { %v1277_v16 = vpop.f32.mrf.mxu3  ;;  %1723 = vst [vmem:[%s3042_s19 + $0xe0] sm:$0xff] %v1189_v47  ;;  %v1457_v57 = vpop.f32.mrf.mxu1 }
 0x1c3   : > { %v1367_v59 = vadd.f32 %v1366_v56, %v1277_v16 }
 0x1c5   : > { %v1456_v3 = vadd.f32 %v1455_v32, %v1367_v59 }
 0x1c7   : > { %1724 = vst [vmem:[%s3042_s19 + $0xe8] sm:$0xff] %v1456_v3  ;;  %v1190_v55 = vpop.f32.mrf.mxu2 }
 0x1c8   : > { %v1191_v19 = vadd.f32 %v1190_v55, %v3034_v26 }
 0x1c9   : > { %v1371_v20 = vpop.f32.mrf.mxu0 }
 0x1ca   : > { %v1279_v42 = vpop.f32.mrf.mxu3  ;;  %1725 = vst [vmem:[%s3042_s19 + $0xf0] sm:$0xff] %v1191_v19  ;;  %v1460_v11 = vpop.f32.mrf.mxu1 }
 0x1cb   : > { %v1369_v17 = vadd.f32 %v1368_v1, %v1279_v42 }
 0x1cd   : > { %v1458_v62 = vadd.f32 %v1457_v57, %v1369_v17 }
 0x1cf   : > { %1726 = vst [vmem:[%s3042_s19 + $0xf8] sm:$0xff] %v1458_v62  ;;  %v1193_v12 = vpop.f32.mrf.mxu2 }
 0x1d0   : > { %v1194_v35 = vadd.f32 %v1193_v12, %v2962_v36 }
 0x1d1   : > { %v1373_v15 = vpop.f32.mrf.mxu0 }
 0x1d2   : > { %v1282_v60 = vpop.f32.mrf.mxu3  ;;  %1727 = vst [vmem:[%s3042_s19 + $0x100] sm:$0xff] %v1194_v35  ;;  %v1462_v43 = vpop.f32.mrf.mxu1 }
 0x1d3   : > { %v1372_v34 = vadd.f32 %v1371_v20, %v1282_v60 }
 0x1d5   : > { %v1461_v9 = vadd.f32 %v1460_v11, %v1372_v34 }
 0x1d7   : > { %1728 = vst [vmem:[%s3042_s19 + $0x108] sm:$0xff] %v1461_v9  ;;  %v1195_v26 = vpop.f32.mrf.mxu2 }
 0x1d8   : > { %v1196_v41 = vadd.f32 %v1195_v26, %v2966_v49 }
 0x1d9   : > { %v1376_v4 = vpop.f32.mrf.mxu0 }
 0x1da   : > { %v1284_v28 = vpop.f32.mrf.mxu3  ;;  %1729 = vst [vmem:[%s3042_s19 + $0x110] sm:$0xff] %v1196_v41  ;;  %v1465_v25 = vpop.f32.mrf.mxu1 }
 0x1db   : > { %v1374_v27 = vadd.f32 %v1373_v15, %v1284_v28 }
 0x1dd   : > { %v1463_v51 = vadd.f32 %v1462_v43, %v1374_v27 }
 0x1df   : > { %1730 = vst [vmem:[%s3042_s19 + $0x118] sm:$0xff] %v1463_v51  ;;  %v1198_v36 = vpop.f32.mrf.mxu2 }
 0x1e0   : > { %v1199_v31 = vadd.f32 %v1198_v36, %v2972_v53 }
 0x1e1   : > { %v1378_v29 = vpop.f32.mrf.mxu0 }
 0x1e2   : > { %v1287_v50 = vpop.f32.mrf.mxu3  ;;  %1731 = vst [vmem:[%s3042_s19 + $0x120] sm:$0xff] %v1199_v31  ;;  %v1467_v24 = vpop.f32.mrf.mxu1 }
 0x1e3   : > { %v1377_v23 = vadd.f32 %v1376_v4, %v1287_v50 }
 0x1e5   : > { %v1466_v10 = vadd.f32 %v1465_v25, %v1377_v23 }
 0x1e7   : > { %1732 = vst [vmem:[%s3042_s19 + $0x128] sm:$0xff] %v1466_v10  ;;  %v1200_v49 = vpop.f32.mrf.mxu2 }
 0x1e8   : > { %v1201_v33 = vadd.f32 %v1200_v49, %v2976_v14 }
 0x1e9   : > { %v1381_v37 = vpop.f32.mrf.mxu0 }
 0x1ea   : > { %v1289_v48 = vpop.f32.mrf.mxu3  ;;  %1733 = vst [vmem:[%s3042_s19 + $0x130] sm:$0xff] %v1201_v33  ;;  %v1470_v44 = vpop.f32.mrf.mxu1 }
 0x1eb   : > { %v1379_v6 = vadd.f32 %v1378_v29, %v1289_v48 }
 0x1ed   : > { %v1468_v54 = vadd.f32 %v1467_v24, %v1379_v6 }
 0x1ef   : > { %1734 = vst [vmem:[%s3042_s19 + $0x138] sm:$0xff] %v1468_v54  ;;  %v1203_v53 = vpop.f32.mrf.mxu2 }
 0x1f0   : > { %v1204_v45 = vadd.f32 %v1203_v53, %v2982_v22 }
 0x1f1   : > { %v1383_v61 = vpop.f32.mrf.mxu0 }
 0x1f2   : > { %v1292_v63 = vpop.f32.mrf.mxu3  ;;  %1735 = vst [vmem:[%s3042_s19 + $0x140] sm:$0xff] %v1204_v45  ;;  %v1472_v18 = vpop.f32.mrf.mxu1 }
 0x1f3   : > { %v1382_v0 = vadd.f32 %v1381_v37, %v1292_v63 }
 0x1f5   : > { %v1471_v56 = vadd.f32 %v1470_v44, %v1382_v0 }
 0x1f7   : > { %1736 = vst [vmem:[%s3042_s19 + $0x148] sm:$0xff] %v1471_v56  ;;  %v1205_v14 = vpop.f32.mrf.mxu2 }
 0x1f8   : > { %v1206_v32 = vadd.f32 %v1205_v14, %v2986_v46 }
 0x1f9   : > { %v1386_v47 = vpop.f32.mrf.mxu0 }
 0x1fa   : > { %v1294_v39 = vpop.f32.mrf.mxu3  ;;  %1737 = vst [vmem:[%s3042_s19 + $0x150] sm:$0xff] %v1206_v32  ;;  %v1475_v16 = vpop.f32.mrf.mxu1 }
 0x1fb   : > { %v1384_v5 = vadd.f32 %v1383_v61, %v1294_v39 }
 0x1fd   : > { %v1473_v59 = vadd.f32 %v1472_v18, %v1384_v5 }
 0x1ff   : > { %1738 = vst [vmem:[%s3042_s19 + $0x158] sm:$0xff] %v1473_v59  ;;  %v1208_v22 = vpop.f32.mrf.mxu2 }
 0x200   : > { %v1209_v1 = vadd.f32 %v1208_v22, %v2992_v8 }
 0x201   : > { %v1388_v55 = vpop.f32.mrf.mxu0 }
 0x202   : > { %v1297_v57 = vpop.f32.mrf.mxu3  ;;  %1739 = vst [vmem:[%s3042_s19 + $0x160] sm:$0xff] %v1209_v1  ;;  %v1477_v19 = vpop.f32.mrf.mxu1 }
 0x203   : > { %v1387_v3 = vadd.f32 %v1386_v47, %v1297_v57 }
 0x205   : > { %v1476_v42 = vadd.f32 %v1475_v16, %v1387_v3 }
 0x207   : > { %1740 = vst [vmem:[%s3042_s19 + $0x168] sm:$0xff] %v1476_v42  ;;  %v1210_v46 = vpop.f32.mrf.mxu2 }
 0x208   : > { %v1211_v17 = vadd.f32 %v1210_v46, %v2996_v13 }
 0x209   : > { %v1391_v62 = vpop.f32.mrf.mxu0 }
 0x20a   : > { %v1299_v20 = vpop.f32.mrf.mxu3  ;;  %1741 = vst [vmem:[%s3042_s19 + $0x170] sm:$0xff] %v1211_v17  ;;  %v1480_v12 = vpop.f32.mrf.mxu1 }
 0x20b   : > { %v1389_v11 = vadd.f32 %v1388_v55, %v1299_v20 }
 0x20d   : > { %v1478_v35 = vadd.f32 %v1477_v19, %v1389_v11 }
 0x20f   : > { %1742 = vst [vmem:[%s3042_s19 + $0x178] sm:$0xff] %v1478_v35  ;;  %v1213_v8 = vpop.f32.mrf.mxu2 }
 0x210   : > { %v1214_v60 = vadd.f32 %v1213_v8, %v3002_v21 }
 0x211   : > { %v1393_v43 = vpop.f32.mrf.mxu0 }
 0x212   : > { %v1302_v34 = vpop.f32.mrf.mxu3  ;;  %1743 = vst [vmem:[%s3042_s19 + $0x180] sm:$0xff] %v1214_v60  ;;  %v1482_v9 = vpop.f32.mrf.mxu1 }
 0x213   : > { %v1392_v15 = vadd.f32 %v1391_v62, %v1302_v34 }
 0x215   : > { %v1481_v26 = vadd.f32 %v1480_v12, %v1392_v15 }
 0x217   : > { %1744 = vst [vmem:[%s3042_s19 + $0x188] sm:$0xff] %v1481_v26  ;;  %v1215_v13 = vpop.f32.mrf.mxu2 }
 0x218   : > { %v1216_v41 = vadd.f32 %v1215_v13, %v3006_v2 }
 0x219   : > { %v1396_v4 = vpop.f32.mrf.mxu0 }
 0x21a   : > { %v1304_v28 = vpop.f32.mrf.mxu3  ;;  %1745 = vst [vmem:[%s3042_s19 + $0x190] sm:$0xff] %v1216_v41  ;;  %v1485_v25 = vpop.f32.mrf.mxu1 }
 0x21b   : > { %v1394_v27 = vadd.f32 %v1393_v43, %v1304_v28 }
 0x21d   : > { %v1483_v21 = vadd.f32 %v1482_v9, %v1394_v27 }
 0x21f   : > { %1746 = vst [vmem:[%s3042_s19 + $0x198] sm:$0xff] %v1483_v21  ;;  %v1218_v51 = vpop.f32.mrf.mxu2 }
 0x220   : > { %v1219_v36 = vadd.f32 %v1218_v51, %v3012_v52 }
 0x221   : > { %v1398_v23 = vpop.f32.mrf.mxu0 }
 0x222   : > { %v1307_v31 = vpop.f32.mrf.mxu3  ;;  %1747 = vst [vmem:[%s3042_s19 + $0x1a0] sm:$0xff] %v1219_v36  ;;  %v1487_v29 = vpop.f32.mrf.mxu1 }
 0x223   : > { %v1397_v50 = vadd.f32 %v1396_v4, %v1307_v31 }
 0x225   : > { %v1486_v2 = vadd.f32 %v1485_v25, %v1397_v50 }
 0x227   : > { %1748 = vst [vmem:[%s3042_s19 + $0x1a8] sm:$0xff] %v1486_v2  ;;  %v1220_v24 = vpop.f32.mrf.mxu2 }
 0x228   : > { %v1221_v10 = vadd.f32 %v1220_v24, %v3016_v40 }
 0x229   : > { %v1401_v48 = vpop.f32.mrf.mxu0 }
 0x22a   : > { %v1309_v49 = vpop.f32.mrf.mxu3  ;;  %1749 = vst [vmem:[%s3042_s19 + $0x1b0] sm:$0xff] %v1221_v10  ;;  %v1490_v52 = vpop.f32.mrf.mxu1 }
 0x22b   : > { %v1399_v33 = vadd.f32 %v1398_v23, %v1309_v49 }
 0x22d   : > { %v1488_v6 = vadd.f32 %v1487_v29, %v1399_v33 }
 0x22f   : > { %1750 = vst [vmem:[%s3042_s19 + $0x1b8] sm:$0xff] %v1488_v6  ;;  %v1223_v37 = vpop.f32.mrf.mxu2 }
 0x230   : > { %v1224_v44 = vadd.f32 %v1223_v37, %v3022_v38 }
 0x231   : > { %v1403_v63 = vpop.f32.mrf.mxu0 }
 0x232   : > { %v1312_v54 = vpop.f32.mrf.mxu3  ;;  %1751 = vst [vmem:[%s3042_s19 + $0x1c0] sm:$0xff] %v1224_v44  ;;  %v1492_v40 = vpop.f32.mrf.mxu1 }
 0x233   : > { %v1402_v53 = vadd.f32 %v1401_v48, %v1312_v54 }
 0x235   : > { %v1491_v45 = vadd.f32 %v1490_v52, %v1402_v53 }
 0x237   : > { %1752 = vst [vmem:[%s3042_s19 + $0x1c8] sm:$0xff] %v1491_v45  ;;  %v1225_v0 = vpop.f32.mrf.mxu2 }
 0x238   : > { %v1226_v61 = vadd.f32 %v1225_v0, %v3026_v7 }
 0x239   : > { %v1406_v38 = vpop.f32.mrf.mxu0 }
 0x23a   : > { %v1314_v18 = vpop.f32.mrf.mxu3  ;;  %1753 = vst [vmem:[%s3042_s19 + $0x1d0] sm:$0xff] %v1226_v61  ;;  %v1495_v39 = vpop.f32.mrf.mxu1 }
 0x23b   : > { %v1404_v56 = vadd.f32 %v1403_v63, %v1314_v18 }
 0x23d   : > { %v1493_v14 = vadd.f32 %v1492_v40, %v1404_v56 }
 0x23f   : > { %1754 = vst [vmem:[%s3042_s19 + $0x1d8] sm:$0xff] %v1493_v14  ;;  %v1228_v32 = vpop.f32.mrf.mxu2 }
 0x240   : > { %v1229_v5 = vadd.f32 %v1228_v32, %v3032_v30 }
 0x241   : > { %v1408_v22 = vpop.f32.mrf.mxu0 }
 0x242   : > { %v1317_v47 = vpop.f32.mrf.mxu3  ;;  %1755 = vst [vmem:[%s3042_s19 + $0x1e0] sm:$0xff] %v1229_v5  ;;  %v1497_v3 = vpop.f32.mrf.mxu1 }
 0x243   : > { %v1407_v16 = vadd.f32 %v1406_v38, %v1317_v47 }
 0x245   : > { %v1496_v59 = vadd.f32 %v1495_v39, %v1407_v16 }
 0x247   : > { %1756 = vst [vmem:[%s3042_s19 + $0x1e8] sm:$0xff] %v1496_v59  ;;  %v1230_v7 = vpop.f32.mrf.mxu2 }
 0x248   : > { %v1231_v30 = vadd.f32 %v1230_v7, %v3036_v58 }
 0x24a   : > { %v1319_v1 = vpop.f32.mrf.mxu3  ;;  %1757 = vst [vmem:[%s3042_s19 + $0x1f0] sm:$0xff] %v1231_v30 }
 0x24b   : > { %v1409_v57 = vadd.f32 %v1408_v22, %v1319_v1 }
 0x24d   : > { %v1498_v55 = vadd.f32 %v1497_v3, %v1409_v57 }
 0x24f   : > { %1758 = vst [vmem:[%s3042_s19 + $0x1f8] sm:$0xff] %v1498_v55 }
 0x250   : > { %2568 = shalt.err (!%p2565_p0)
}
 0x251   : > { %s2635_s30 = smov 256   ;;  %s2636_s6 = smov 512  }
 0x252   : > { %s2637_s7 = smov 16  }
 0x253   : > { %2406 = dma.vmem_to_hbm [thread:$0]  (%p2732_p5), %s1776_s22, 8192, %s1778_s23, %s1760_s12, %s2635_s30, %s2636_s6, %s2637_s7  }
 0x254 PF: > { %s1792_s17 = sand.u32 1, %s2607_s9   ;;  %p2417_p3 = pnand %p1889_p11, %p2702_p6 }
 0x255   : > { %s1793_s19 = scalar_lea.sflag [#allocation5], %s1792_s17 }
 0x256   : > { %p2418_p7 = pneg %p2417_p3 }
 0x258   : > { %2602 = dma.done.wait (%p2418_p7), %s1793_s19, 8192  }
 0x259   : > { %2604 = vsyncadd (%p2418_p7), %s1793_s19, 4294959104  ;;  %s19_s14 = sadd.s32 1, %s2627_s14   ;;  %s3202_s9 = smov %s2611_s10 }
 0x25a   : > { %p16_p9 = scmp.ge.s32.totalorder %s19_s14, 4   ;;  %s3203_s10 = smov %s2615_s11 }
 0x25b   : > { %s3204_s11 = smov %s2741_s8  ;;  %s3205_s12 = smov %s2623_s13 }
 0x25c   : > { %s3206_s13 = smov %s3208_s29  ;;  %18 = sbr.rel (!%p16_p9) target bundleno = 7 (0x7), region = 87 }
 0x261   :  { %1799 = vsyncpa [#allocation4], 1 }
 0x262   :  { %1801 = vsyncpa [#allocation4 + $0x1], 1 }
 0x263   :  { %1802 = vsyncpa [#allocation7], 1 }
 0x264   :  { %1804 = vsyncpa [#allocation7 + $0x1], 1 }
 0x265   :  { %1805 = vsyncpa [#allocation5], 1 }
 0x266   :  { %1807 = vsyncpa [#allocation5 + $0x1], 1 }

</bundles_post_ra>
